<compile_context>
chip_gen: v6e
topology: v6e:2x2x1
jax: 0.10.0
libtpu: 0.0.40
codegen_flags: <defaults>
</compile_context>

<pallas_src>
import functools

import jax
import jax.numpy as jnp
import numpy as np
from jax.experimental import pallas as pl
from jax.experimental.pallas import tpu as pltpu

INPUT_SIZE = 4
HIDDEN_SIZE = 32


def _fsmm_kernel(in_size, e0, e1,
                 params_ref,                    # SMEM (7,) folded scalars
                 xt_ref,                        # VMEM (IN, Bp)   full batch, lanes = batch
                 xb_ref,                        # VMEM (TM, IN)   row tile of x
                 wrow_ref,                      # VMEM (H, IN+2)  [W1 cols | b1 | -alpha*grad]
                 wcol_ref,                      # VMEM (IN+3, H)  [W1.T rows | b1 | w2 | grad]
                 soc_ref, loss1_ref, loss2_ref):
    cQ    = params_ref[0]   # delta / Q
    R0    = params_ref[1]
    alpha = params_ref[2]   # sum(V1 * V2)      (d f_soc / d soc)
    beta  = params_ref[3]   # sum(c1 * V2) + c2 (f_soc offset)
    b2    = params_ref[4]   # mlp.fc2.bias
    cA    = params_ref[5]   # delta / (R1 * C1)
    cB    = params_ref[6]   # 1 / C1

    IN = in_size

    # ---- row-oriented full-batch pass: d_u1 as a lane-dense (1, Bp) row -----
    xt   = xt_ref[...]                         # (IN, Bp)
    wrow = wrow_ref[...]                       # (H, IN+2)
    b1c  = wrow[:, IN:IN + 1]                  # (H, 1)
    nagc = wrow[:, IN + 1:IN + 2]              # (H, 1)  == -alpha * w2 * W1[:, -1]

    h_row = wrow[:, 0:1] * xt[0:1, :] + b1c    # (H, Bp), unrolled tiny-K VPU FMA
    for k in range(1, IN):
        h_row = h_row + wrow[:, k:k + 1] * xt[k:k + 1, :]
    d_u1_row = jnp.sum(jnp.where(h_row > 0.0, nagc, 0.0),
                       axis=0, keepdims=True)  # (1, Bp)
    if (e0 != 0.0) or (e1 != 0.0):             # trace-time fold (0 for IN == 4)
        d_u1_row = d_u1_row + (e0 - R0 * e1)

    # ---- column-oriented per-tile pass: soc / loss1 / col as (TM, 1) --------
    xb   = xb_ref[...]                         # (TM, IN)
    wcol = wcol_ref[...]                       # (IN+3, H)
    b1r  = wcol[IN:IN + 1, :]                  # (1, H)
    w2r  = wcol[IN + 1:IN + 2, :]              # (1, H)  == mlp.fc2.weight
    grr  = wcol[IN + 2:IN + 3, :]              # (1, H)  == w2 * W1[:, -1]

    h_col = xb[:, 0:1] * wcol[0:1, :] + b1r    # (TM, H)
    for k in range(1, IN):
        h_col = h_col + xb[:, k:k + 1] * wcol[k:k + 1, :]
    r_col    = jnp.maximum(h_col, 0.0)
    soc_col  = jnp.sum(r_col * w2r, axis=1, keepdims=True) + b2          # (TM, 1)
    dsoc_col = jnp.sum(jnp.where(h_col > 0.0, grr, 0.0),
                       axis=1, keepdims=True)                            # (TM, 1)

    x0 = xb[:, 0:1]
    x1 = xb[:, 1:2]
    loss1_col = cQ * x1 + dsoc_col                                       # (TM, 1)
    u1_col    = x0 - (alpha * soc_col + beta) - R0 * x1                  # (TM, 1)
    col_col   = cA * u1_col - cB * x1                                    # (TM, 1)

    soc_ref[...]   = soc_col
    loss1_ref[...] = loss1_col
    # torch broadcast (B,) + (B,1) -> (B,B); rank-1 outer structure.
    loss2_ref[...] = d_u1_row + col_col                                  # (TM, Bp)


def fsmm_forward(x, scalars, W1, b1, W2, b2, V1, c1, V2, c2, *, tile_m=128):
    """scalars = (Q, delta, R0, R1, C1); weights follow nn.Linear conventions."""
    B, in_size = x.shape
    assert in_size >= 2, "forward() indexes x[:, 0:2]"
    H = W1.shape[0]
    assert W2.shape == (1, H), "fc2 must have out_features == 1"
    assert tile_m % 128 == 0, "keep row tiles lane/sublane aligned"
    f32 = jnp.float32

    Q, delta, R0, R1, C1 = [jnp.asarray(s, f32) for s in scalars]
    W1 = W1.astype(f32); b1 = b1.astype(f32)
    W2 = W2.astype(f32); b2 = b2.astype(f32)
    V1 = V1.astype(f32); c1 = c1.astype(f32)
    V2 = V2.astype(f32); c2 = c2.astype(f32)

    last = in_size - 1
    e0 = 1.0 if last == 0 else 0.0            # d x[:,0] / d x[:,-1]
    e1 = 1.0 if last == 1 else 0.0            # d x[:,1] / d x[:,-1]

    # Fold the two purely-linear f_f_soc layers into scalars.
    alpha = jnp.sum(V1.reshape(-1) * V2.reshape(-1))
    beta  = jnp.sum(c1.reshape(-1) * V2.reshape(-1)) + c2.reshape(())
    # Exact gradient row of the 2-layer ReLU MLP wrt x[:, -1].
    grad_row = W2.reshape(-1) * W1[:, -1]                                # (H,)

    params = jnp.stack([delta / Q, R0, alpha, beta, b2.reshape(()),
                        delta / (R1 * C1), 1.0 / C1]).astype(f32)        # (7,)

    # Packed per-hidden-unit vectors (one constant-resident DMA each).
    wrow = jnp.concatenate([W1, b1.reshape(H, 1),
                            (-alpha * grad_row).reshape(H, 1)], axis=1)  # (H, IN+2)
    wcol = jnp.concatenate([W1.T, b1.reshape(1, H), W2.reshape(1, H),
                            grad_row.reshape(1, H)], axis=0)             # (IN+3, H)

    # Pad batch to a lane-dense multiple of tile_m (>= 128); slice after call.
    Bp = max(tile_m, pl.cdiv(B, tile_m) * tile_m)
    xp = x.astype(f32)
    if Bp != B:
        xp = jnp.pad(xp, ((0, Bp - B), (0, 0)))
    xt = xp.T                                                            # (IN, Bp)

    n_tiles = Bp // tile_m
    cost = pl.CostEstimate(
        flops=int(n_tiles * (2 * in_size + 4) * H * Bp
                  + n_tiles * (2 * in_size + 6) * H * tile_m
                  + 2 * Bp * Bp),
        transcendentals=0,
        bytes_accessed=int(4 * (Bp * Bp + 2 * Bp
                                + (n_tiles + 1) * in_size * Bp
                                + H * (2 * in_size + 5))),
    )

    smem = pltpu.MemorySpace.SMEM
    kernel = functools.partial(_fsmm_kernel, in_size, e0, e1)
    soc_p, loss1_p, loss2_p = pl.pallas_call(
        kernel,
        out_shape=(jax.ShapeDtypeStruct((Bp, 1), f32),
                   jax.ShapeDtypeStruct((Bp, 1), f32),
                   jax.ShapeDtypeStruct((Bp, Bp), f32)),
        grid=(n_tiles,),
        in_specs=[
            pl.BlockSpec(memory_space=smem),                          # params
            pl.BlockSpec((in_size, Bp),     lambda i: (0, 0)),        # xT (resident)
            pl.BlockSpec((tile_m, in_size), lambda i: (i, 0)),        # x row tile
            pl.BlockSpec((H, in_size + 2),  lambda i: (0, 0)),        # wrow (resident)
            pl.BlockSpec((in_size + 3, H),  lambda i: (0, 0)),        # wcol (resident)
        ],
        out_specs=(
            pl.BlockSpec((tile_m, 1),  lambda i: (i, 0)),             # soc
            pl.BlockSpec((tile_m, 1),  lambda i: (i, 0)),             # loss1
            pl.BlockSpec((tile_m, Bp), lambda i: (i, 0)),             # loss2 (lane-dense)
        ),
        compiler_params=pltpu.CompilerParams(
            dimension_semantics=("parallel",)),
        cost_estimate=cost,
    )(params, xt, xp, wrow, wcol)

    return soc_p[:B], loss1_p[:B], loss2_p[:B, :B]


def fsmm_reference(x, scalars, W1, b1, W2, b2, V1, c1, V2, c2):
    """Pure-JAX reference using autodiff (mirrors torch.autograd.grad)."""
    Q, delta, R0, R1, C1 = scalars
    Bsz = x.shape[0]

    def mlp(xx):
        return jnp.maximum(xx @ W1.T + b1, 0.0) @ W2.T + b2

    soc, vjp_soc = jax.vjp(mlp, x)
    d_soc = vjp_soc(jnp.ones_like(soc))[0][:, -1].reshape(Bsz, 1)
    loss1 = (delta / Q) * x[:, 1:2] + d_soc

    def u1_fn(xx):
        s = mlp(xx)
        f = (s @ V1.T + c1) @ V2.T + c2
        return xx[:, 0:1] - f - xx[:, 1:2] * R0

    u1, vjp_u1 = jax.vjp(u1_fn, x)
    d_u1 = vjp_u1(jnp.ones_like(u1))[0][:, -1]                 # (B,)
    loss2 = d_u1 + (delta / (R1 * C1)) * u1 - x[:, 1:2] / C1   # (B, B)
    return soc, loss1, loss2


if __name__ == "__main__":
    B, IN, H = 8, INPUT_SIZE, HIDDEN_SIZE
    key = jax.random.PRNGKey(0)
    kx, k1, k2, k3, k4, k5, k6, k7, k8 = jax.random.split(key, 9)

    x  = jax.random.normal(kx, (B, IN), dtype=jnp.float32)
    W1 = jax.random.normal(k1, (H, IN), dtype=jnp.float32) * 0.5   # mlp.fc1
    b1 = jax.random.normal(k2, (H,),    dtype=jnp.float32) * 0.1
    W2 = jax.random.normal(k3, (1, H),  dtype=jnp.float32) * 0.3   # mlp.fc2
    b2 = jax.random.normal(k4, (1,),    dtype=jnp.float32) * 0.1
    V1 = jax.random.normal(k5, (H, 1),  dtype=jnp.float32) * 0.5   # f_f_soc1
    c1 = jax.random.normal(k6, (H,),    dtype=jnp.float32) * 0.1
    V2 = jax.random.normal(k7, (1, H),  dtype=jnp.float32) * 0.3   # f_f_soc2
    c2 = jax.random.normal(k8, (1,),    dtype=jnp.float32) * 0.1
    scalars = (2.9, 1.0, 1.0, 1.0, 1.0)   # Q, delta, R0, R1, C1

    soc, loss1, loss2 = fsmm_forward(x, scalars, W1, b1, W2, b2, V1, c1, V2, c2)
    jax.block_until_ready((soc, loss1, loss2))

    soc_r, loss1_r, loss2_r = fsmm_reference(x, scalars, W1, b1, W2, b2,
                                             V1, c1, V2, c2)
    np.testing.assert_allclose(np.asarray(soc),   np.asarray(soc_r),   rtol=2e-3, atol=2e-3)
    np.testing.assert_allclose(np.asarray(loss1), np.asarray(loss1_r), rtol=2e-3, atol=2e-3)
    np.testing.assert_allclose(np.asarray(loss2), np.asarray(loss2_r), rtol=2e-3, atol=2e-3)

    print("KERNEL_OK")
</pallas_src>

<mosaic_0001>
module attributes {stable_mosaic.version = 11 : i64} {
  func.func @_fsmm_kernel(%arg0: i32, %arg1: memref<7xf32, #tpu.memory_space<smem>>, %arg2: memref<4x128xf32, #tpu.memory_space<vmem>>, %arg3: memref<128x4xf32, #tpu.memory_space<vmem>>, %arg4: memref<32x6xf32, #tpu.memory_space<vmem>>, %arg5: memref<7x32xf32, #tpu.memory_space<vmem>>, %arg6: memref<128x1xf32, #tpu.memory_space<vmem>>, %arg7: memref<128x1xf32, #tpu.memory_space<vmem>>, %arg8: memref<128x128xf32, #tpu.memory_space<vmem>>) attributes {dimension_semantics = [#tpu.dimension_semantics<parallel>], iteration_bounds = array<i64: 1>, scalar_prefetch = 0 : i64, scratch_operands = 0 : i64, tpu.core_type = #tpu.core_type<tc>, window_params = [{transform_indices = @transform_0, window_bounds = array<i64: 7>}, {pipeline_mode = #tpu.pipeline_mode<synchronous>, transform_indices = @transform_1, window_bounds = array<i64: 4, 128>}, {transform_indices = @transform_2, window_bounds = array<i64: 128, 4>}, {pipeline_mode = #tpu.pipeline_mode<synchronous>, transform_indices = @transform_3, window_bounds = array<i64: 32, 6>}, {pipeline_mode = #tpu.pipeline_mode<synchronous>, transform_indices = @transform_4, window_bounds = array<i64: 7, 32>}, {transform_indices = @transform_5, window_bounds = array<i64: 128, 1>}, {transform_indices = @transform_6, window_bounds = array<i64: 128, 1>}, {transform_indices = @transform_7, window_bounds = array<i64: 128, 128>}]} {
    %c0 = arith.constant 0 : index
    %0 = memref.load %arg1[%c0] : memref<7xf32, #tpu.memory_space<smem>>
    %c1 = arith.constant 1 : index
    %1 = memref.load %arg1[%c1] : memref<7xf32, #tpu.memory_space<smem>>
    %c2 = arith.constant 2 : index
    %2 = memref.load %arg1[%c2] : memref<7xf32, #tpu.memory_space<smem>>
    %c3 = arith.constant 3 : index
    %3 = memref.load %arg1[%c3] : memref<7xf32, #tpu.memory_space<smem>>
    %c4 = arith.constant 4 : index
    %4 = memref.load %arg1[%c4] : memref<7xf32, #tpu.memory_space<smem>>
    %c5 = arith.constant 5 : index
    %5 = memref.load %arg1[%c5] : memref<7xf32, #tpu.memory_space<smem>>
    %c6 = arith.constant 6 : index
    %6 = memref.load %arg1[%c6] : memref<7xf32, #tpu.memory_space<smem>>
    %c0_0 = arith.constant 0 : index
    %c0_1 = arith.constant 0 : index
    %7 = vector.load %arg2[%c0_0, %c0_1] : memref<4x128xf32, #tpu.memory_space<vmem>>, vector<4x128xf32>
    %c0_2 = arith.constant 0 : index
    %c0_3 = arith.constant 0 : index
    %8 = vector.load %arg4[%c0_2, %c0_3] : memref<32x6xf32, #tpu.memory_space<vmem>>, vector<32x6xf32>
    %9 = vector.extract_strided_slice %8 {offsets = [0, 4], sizes = [32, 1], strides = [1, 1]} : vector<32x6xf32> to vector<32x1xf32>
    %10 = vector.extract_strided_slice %8 {offsets = [0, 5], sizes = [32, 1], strides = [1, 1]} : vector<32x6xf32> to vector<32x1xf32>
    %11 = vector.extract_strided_slice %8 {offsets = [0, 0], sizes = [32, 1], strides = [1, 1]} : vector<32x6xf32> to vector<32x1xf32>
    %12 = vector.extract_strided_slice %7 {offsets = [0, 0], sizes = [1, 128], strides = [1, 1]} : vector<4x128xf32> to vector<1x128xf32>
    %13 = vector.broadcast %11 : vector<32x1xf32> to vector<32x128xf32>
    %14 = vector.broadcast %12 : vector<1x128xf32> to vector<32x128xf32>
    %15 = arith.mulf %13, %14 : vector<32x128xf32>
    %16 = vector.broadcast %9 : vector<32x1xf32> to vector<32x128xf32>
    %17 = arith.addf %15, %16 : vector<32x128xf32>
    %18 = vector.extract_strided_slice %8 {offsets = [0, 1], sizes = [32, 1], strides = [1, 1]} : vector<32x6xf32> to vector<32x1xf32>
    %19 = vector.extract_strided_slice %7 {offsets = [1, 0], sizes = [1, 128], strides = [1, 1]} : vector<4x128xf32> to vector<1x128xf32>
    %20 = vector.broadcast %18 : vector<32x1xf32> to vector<32x128xf32>
    %21 = vector.broadcast %19 : vector<1x128xf32> to vector<32x128xf32>
    %22 = arith.mulf %20, %21 : vector<32x128xf32>
    %23 = arith.addf %17, %22 : vector<32x128xf32>
    %24 = vector.extract_strided_slice %8 {offsets = [0, 2], sizes = [32, 1], strides = [1, 1]} : vector<32x6xf32> to vector<32x1xf32>
    %25 = vector.extract_strided_slice %7 {offsets = [2, 0], sizes = [1, 128], strides = [1, 1]} : vector<4x128xf32> to vector<1x128xf32>
    %26 = vector.broadcast %24 : vector<32x1xf32> to vector<32x128xf32>
    %27 = vector.broadcast %25 : vector<1x128xf32> to vector<32x128xf32>
    %28 = arith.mulf %26, %27 : vector<32x128xf32>
    %29 = arith.addf %23, %28 : vector<32x128xf32>
    %30 = vector.extract_strided_slice %8 {offsets = [0, 3], sizes = [32, 1], strides = [1, 1]} : vector<32x6xf32> to vector<32x1xf32>
    %31 = vector.extract_strided_slice %7 {offsets = [3, 0], sizes = [1, 128], strides = [1, 1]} : vector<4x128xf32> to vector<1x128xf32>
    %32 = vector.broadcast %30 : vector<32x1xf32> to vector<32x128xf32>
    %33 = vector.broadcast %31 : vector<1x128xf32> to vector<32x128xf32>
    %34 = arith.mulf %32, %33 : vector<32x128xf32>
    %35 = arith.addf %29, %34 : vector<32x128xf32>
    %cst = arith.constant 0.000000e+00 : f32
    %36 = vector.broadcast %cst : f32 to vector<32x128xf32>
    %37 = arith.cmpf ogt, %35, %36 : vector<32x128xf32>
    %cst_4 = arith.constant 0.000000e+00 : f32
    %38 = vector.shape_cast %10 : vector<32x1xf32> to vector<32x1xf32>
    %39 = vector.broadcast %38 : vector<32x1xf32> to vector<32x128xf32>
    %40 = vector.broadcast %cst_4 : f32 to vector<32x128xf32>
    %41 = arith.select %37, %39, %40 : vector<32x128xi1>, vector<32x128xf32>
    %cst_5 = arith.constant dense<0.000000e+00> : vector<128xf32>
    %42 = vector.multi_reduction <add>, %41, %cst_5 [0] : vector<32x128xf32> to vector<128xf32>
    %43 = vector.shape_cast %42 : vector<128xf32> to vector<1x128xf32>
    %c0_6 = arith.constant 0 : index
    %c0_7 = arith.constant 0 : index
    %44 = vector.load %arg3[%c0_6, %c0_7] : memref<128x4xf32, #tpu.memory_space<vmem>>, vector<128x4xf32>
    %c0_8 = arith.constant 0 : index
    %c0_9 = arith.constant 0 : index
    %45 = vector.load %arg5[%c0_8, %c0_9] : memref<7x32xf32, #tpu.memory_space<vmem>>, vector<7x32xf32>
    %46 = vector.extract_strided_slice %45 {offsets = [4, 0], sizes = [1, 32], strides = [1, 1]} : vector<7x32xf32> to vector<1x32xf32>
    %47 = vector.extract_strided_slice %45 {offsets = [5, 0], sizes = [1, 32], strides = [1, 1]} : vector<7x32xf32> to vector<1x32xf32>
    %48 = vector.extract_strided_slice %45 {offsets = [6, 0], sizes = [1, 32], strides = [1, 1]} : vector<7x32xf32> to vector<1x32xf32>
    %49 = vector.extract_strided_slice %44 {offsets = [0, 0], sizes = [128, 1], strides = [1, 1]} : vector<128x4xf32> to vector<128x1xf32>
    %50 = vector.extract_strided_slice %45 {offsets = [0, 0], sizes = [1, 32], strides = [1, 1]} : vector<7x32xf32> to vector<1x32xf32>
    %51 = vector.broadcast %49 : vector<128x1xf32> to vector<128x32xf32>
    %52 = vector.broadcast %50 : vector<1x32xf32> to vector<128x32xf32>
    %53 = arith.mulf %51, %52 : vector<128x32xf32>
    %54 = vector.broadcast %46 : vector<1x32xf32> to vector<128x32xf32>
    %55 = arith.addf %53, %54 : vector<128x32xf32>
    %56 = vector.extract_strided_slice %44 {offsets = [0, 1], sizes = [128, 1], strides = [1, 1]} : vector<128x4xf32> to vector<128x1xf32>
    %57 = vector.extract_strided_slice %45 {offsets = [1, 0], sizes = [1, 32], strides = [1, 1]} : vector<7x32xf32> to vector<1x32xf32>
    %58 = vector.broadcast %56 : vector<128x1xf32> to vector<128x32xf32>
    %59 = vector.broadcast %57 : vector<1x32xf32> to vector<128x32xf32>
    %60 = arith.mulf %58, %59 : vector<128x32xf32>
    %61 = arith.addf %55, %60 : vector<128x32xf32>
    %62 = vector.extract_strided_slice %44 {offsets = [0, 2], sizes = [128, 1], strides = [1, 1]} : vector<128x4xf32> to vector<128x1xf32>
    %63 = vector.extract_strided_slice %45 {offsets = [2, 0], sizes = [1, 32], strides = [1, 1]} : vector<7x32xf32> to vector<1x32xf32>
    %64 = vector.broadcast %62 : vector<128x1xf32> to vector<128x32xf32>
    %65 = vector.broadcast %63 : vector<1x32xf32> to vector<128x32xf32>
    %66 = arith.mulf %64, %65 : vector<128x32xf32>
    %67 = arith.addf %61, %66 : vector<128x32xf32>
    %68 = vector.extract_strided_slice %44 {offsets = [0, 3], sizes = [128, 1], strides = [1, 1]} : vector<128x4xf32> to vector<128x1xf32>
    %69 = vector.extract_strided_slice %45 {offsets = [3, 0], sizes = [1, 32], strides = [1, 1]} : vector<7x32xf32> to vector<1x32xf32>
    %70 = vector.broadcast %68 : vector<128x1xf32> to vector<128x32xf32>
    %71 = vector.broadcast %69 : vector<1x32xf32> to vector<128x32xf32>
    %72 = arith.mulf %70, %71 : vector<128x32xf32>
    %73 = arith.addf %67, %72 : vector<128x32xf32>
    %cst_10 = arith.constant 0.000000e+00 : f32
    %74 = vector.broadcast %cst_10 : f32 to vector<128x32xf32>
    %75 = arith.maximumf %73, %74 : vector<128x32xf32>
    %76 = vector.broadcast %47 : vector<1x32xf32> to vector<128x32xf32>
    %77 = arith.mulf %75, %76 : vector<128x32xf32>
    %cst_11 = arith.constant dense<0.000000e+00> : vector<128xf32>
    %78 = vector.multi_reduction <add>, %77, %cst_11 [1] : vector<128x32xf32> to vector<128xf32>
    %79 = vector.shape_cast %78 : vector<128xf32> to vector<128x1xf32>
    %80 = vector.broadcast %4 : f32 to vector<128x1xf32>
    %81 = arith.addf %79, %80 : vector<128x1xf32>
    %cst_12 = arith.constant 0.000000e+00 : f32
    %82 = vector.broadcast %cst_12 : f32 to vector<128x32xf32>
    %83 = arith.cmpf ogt, %73, %82 : vector<128x32xf32>
    %cst_13 = arith.constant 0.000000e+00 : f32
    %84 = vector.shape_cast %48 : vector<1x32xf32> to vector<1x32xf32>
    %85 = vector.broadcast %84 : vector<1x32xf32> to vector<128x32xf32>
    %86 = vector.broadcast %cst_13 : f32 to vector<128x32xf32>
    %87 = arith.select %83, %85, %86 : vector<128x32xi1>, vector<128x32xf32>
    %cst_14 = arith.constant dense<0.000000e+00> : vector<128xf32>
    %88 = vector.multi_reduction <add>, %87, %cst_14 [1] : vector<128x32xf32> to vector<128xf32>
    %89 = vector.shape_cast %88 : vector<128xf32> to vector<128x1xf32>
    %90 = vector.extract_strided_slice %44 {offsets = [0, 0], sizes = [128, 1], strides = [1, 1]} : vector<128x4xf32> to vector<128x1xf32>
    %91 = vector.extract_strided_slice %44 {offsets = [0, 1], sizes = [128, 1], strides = [1, 1]} : vector<128x4xf32> to vector<128x1xf32>
    %92 = vector.broadcast %0 : f32 to vector<128x1xf32>
    %93 = arith.mulf %92, %91 : vector<128x1xf32>
    %94 = arith.addf %93, %89 : vector<128x1xf32>
    %95 = vector.broadcast %2 : f32 to vector<128x1xf32>
    %96 = arith.mulf %95, %81 : vector<128x1xf32>
    %97 = vector.broadcast %3 : f32 to vector<128x1xf32>
    %98 = arith.addf %96, %97 : vector<128x1xf32>
    %99 = arith.subf %90, %98 : vector<128x1xf32>
    %100 = vector.broadcast %1 : f32 to vector<128x1xf32>
    %101 = arith.mulf %100, %91 : vector<128x1xf32>
    %102 = arith.subf %99, %101 : vector<128x1xf32>
    %103 = vector.broadcast %5 : f32 to vector<128x1xf32>
    %104 = arith.mulf %103, %102 : vector<128x1xf32>
    %105 = vector.broadcast %6 : f32 to vector<128x1xf32>
    %106 = arith.mulf %105, %91 : vector<128x1xf32>
    %107 = arith.subf %104, %106 : vector<128x1xf32>
    %c0_15 = arith.constant 0 : index
    %c0_16 = arith.constant 0 : index
    %108 = vector.load %arg6[%c0_15, %c0_16] : memref<128x1xf32, #tpu.memory_space<vmem>>, vector<128x1xf32>
    tpu.vector_store %arg6[%c0_15, %c0_16], %81 {strides = array<i32>} : memref<128x1xf32, #tpu.memory_space<vmem>>, vector<128x1xf32>,
    %c0_17 = arith.constant 0 : index
    %c0_18 = arith.constant 0 : index
    %109 = vector.load %arg7[%c0_17, %c0_18] : memref<128x1xf32, #tpu.memory_space<vmem>>, vector<128x1xf32>
    tpu.vector_store %arg7[%c0_17, %c0_18], %94 {strides = array<i32>} : memref<128x1xf32, #tpu.memory_space<vmem>>, vector<128x1xf32>,
    %110 = vector.broadcast %43 : vector<1x128xf32> to vector<128x128xf32>
    %111 = vector.broadcast %107 : vector<128x1xf32> to vector<128x128xf32>
    %112 = arith.addf %110, %111 : vector<128x128xf32>
    %c0_19 = arith.constant 0 : index
    %c0_20 = arith.constant 0 : index
    %113 = vector.load %arg8[%c0_19, %c0_20] : memref<128x128xf32, #tpu.memory_space<vmem>>, vector<128x128xf32>
    tpu.vector_store %arg8[%c0_19, %c0_20], %112 {strides = array<i32>} : memref<128x128xf32, #tpu.memory_space<vmem>>, vector<128x128xf32>,
    return
  }
  func.func @transform_0(%arg0: i32) -> i32 {
    %c0_i32 = arith.constant 0 : i32
    %c0_i32_0 = arith.constant 0 : i32
    return %c0_i32 : i32
  }
  func.func @transform_1(%arg0: i32) -> (i32, i32) {
    %c0_i32 = arith.constant 0 : i32
    %c0_i32_0 = arith.constant 0 : i32
    %c0_i32_1 = arith.constant 0 : i32
    return %c0_i32, %c0_i32_0 : i32, i32
  }
  func.func @transform_2(%arg0: i32) -> (i32, i32) {
    %c0_i32 = arith.constant 0 : i32
    %c0_i32_0 = arith.constant 0 : i32
    return %arg0, %c0_i32 : i32, i32
  }
  func.func @transform_3(%arg0: i32) -> (i32, i32) {
    %c0_i32 = arith.constant 0 : i32
    %c0_i32_0 = arith.constant 0 : i32
    %c0_i32_1 = arith.constant 0 : i32
    return %c0_i32, %c0_i32_0 : i32, i32
  }
  func.func @transform_4(%arg0: i32) -> (i32, i32) {
    %c0_i32 = arith.constant 0 : i32
    %c0_i32_0 = arith.constant 0 : i32
    %c0_i32_1 = arith.constant 0 : i32
    return %c0_i32, %c0_i32_0 : i32, i32
  }
  func.func @transform_5(%arg0: i32) -> (i32, i32) {
    %c0_i32 = arith.constant 0 : i32
    %c0_i32_0 = arith.constant 0 : i32
    return %arg0, %c0_i32 : i32, i32
  }
  func.func @transform_6(%arg0: i32) -> (i32, i32) {
    %c0_i32 = arith.constant 0 : i32
    %c0_i32_0 = arith.constant 0 : i32
    return %arg0, %c0_i32 : i32, i32
  }
  func.func @transform_7(%arg0: i32) -> (i32, i32) {
    %c0_i32 = arith.constant 0 : i32
    %c0_i32_0 = arith.constant 0 : i32
    return %arg0, %c0_i32 : i32, i32
  }
}

</mosaic_0001>

<bundles_post_ra>
// kernel: tpu_custom_call.1
= control target key start
LH: loop header
LB: loop body
LE: loop exit
PB: predicated region body
PF: predicated region fallthrough
CT: control target
= control target key end

     0   :  { %13 = vsyncpa [#allocation4], 0  ;;  %s2693_s0 = inlined_call_operand.vmem [shape: f32[7], index: 0, kind: input, shape index: {}]   ;;  %s2694_s1 = inlined_call_operand.vmem [shape: f32[4,128], index: 1, kind: input, shape index: {}]   ;;  %s2695_s2 = inlined_call_operand.vmem [shape: f32[128,4], index: 2, kind: input, shape index: {}]   ;;  %s2696_s3 = inlined_call_operand.vmem [shape: f32[32,6], index: 3, kind: input, shape index: {}]   ;;  %s2697_s4 = inlined_call_operand.vmem [shape: f32[7,32], index: 4, kind: input, shape index: {}]   ;;  %s2698_s5 = inlined_call_operand.vmem [shape: f32[128,1], index: 5, kind: output, shape index: {0}]   ;;  %s2699_s6 = inlined_call_operand.vmem [shape: f32[128,1], index: 6, kind: output, shape index: {1}]   ;;  %s2700_s7 = inlined_call_operand.hbm [shape: f32[128,128], index: 7, kind: output, shape index: {2}]  }
   0x1   :  { %14 = vsyncpa [#allocation3], 0  ;;  %s21_s26 = sshll.u32 %s2693_s0, 4  ;;  %s22_s26 = int_to_ptr.vmem [resolvable:$true] %s21_s26 }
   0x2   :  { %s1415_s27 = scalar_lea.vmem %s22_s26, 16  ;;  %p1420_p1 = scmp.lt.s32.totalorder %s22_s26, %s22_s26 }
   0x3   :  { %p1416_p0 = scmp.ne.s32.totalorder %s22_s26, %s1415_s27  ;;  %p1421_p2 = scmp.lt.s32.totalorder %s1415_s27, %s1415_s27 }
   0x5   :  { %p1422_p3 = por %p1421_p2, %p1420_p1 }
   0x7   :  { %p1423_p4 = pnand %p1422_p3, %p1416_p0 }
   0x9   :  { %1426 = shalt.err (!%p1423_p4)
}
   0xa   :  { %s1451_s28 = smov [#allocation2]  }
   0xb   :  { %24 = dma.vmem_to_smem %s22_s26, 16, %s1451_s28, [#allocation4]  }
   0xc   :  { %1447 = dma.done.wait [#allocation4], 16  }
   0xd   :  { %1448 = vsyncadd [#allocation4], 4294967280 }
   0xe   :  { %36 = sfence }
   0xf   :  { %v47_v0 = vld [vmem:[%s2696_s3 + $0x10] sm:$0xff]  ;;  %v1511_v1 = vld [vmem:[%s2696_s3] sm:$0xff]  ;;  %v1452_v2 = vmov 4   ;;  %v1453_v3 = vmov 0   ;;  %v48_v4 = vld [vmem:[%s2696_s3 + $0x18] sm:$0xff]  ;;  %v1454_v6 = vmov 5   ;;  %v69_v30 = vlaneseq }
  0x10   :  { %1383 = vset.pattern.permute.xlu0 %v1452_v2  ;;  %1382 = vset.pattern.permute.xlu1 %v1453_v3  ;;  %v1521_v5 = vld [vmem:[%s2696_s3 + $0x8] sm:$0xff]  ;;  %v1455_v7 = vmov 1   ;;  %v1532_v8 = vld [vmem:[%s2695_s2] sm:$0xff]  ;;  %v1538_v9 = vld [vmem:[%s2695_s2 + $0x18] sm:$0xff]  ;;  %v1456_v11 = vmov 2   ;;  %v1457_v14 = vmov 3  }
  0x11   :  { %61 = vperm.xlu1 %1382, %v47_v0   ;;  %78 = vperm.xlu0 %1383, %v1511_v1   ;;  %v1544_v10 = vld [vmem:[%s2695_s2 + $0x28] sm:$0xff]  ;;  %v1552_v12 = vld [vmem:[%s2695_s2 + $0x38] sm:$0xff]  ;;  %v1595_v19 = vld [vmem:[%s2695_s2 + $0x10] sm:$0xff]  ;;  %v1665_v31 = vshrl.u32 %v69_v30, 7  ;;  %vm687_vm1 = vcmask 261120   ;;  %s1458_s22 = smov 127  }
  0x12   :  { %v1558_v13 = vld [vmem:[%s2695_s2 + $0x48] sm:$0xff]  ;;  %v1565_v15 = vld [vmem:[%s2695_s2 + $0x58] sm:$0xff]  ;;  %2720 = vst [vmem:[#allocation9_spill] sm:$0xff] %v1595_v19  ;;  %v1600_v20 = vld [vmem:[%s2695_s2 + $0x20] sm:$0xff]  ;;  %s1370_s23 = sld [smem:[#allocation2 + $0x6]]  ;;  %s1459_s15 = smov [#allocation5]  }
  0x13   :  { %v1572_v16 = vld [vmem:[%s2695_s2 + $0x68] sm:$0xff]  ;;  %v1578_v17 = vld [vmem:[%s2695_s2 + $0x78] sm:$0xff]  ;;  %2721 = vst [vmem:[#allocation10_spill] sm:$0xff] %v1600_v20  ;;  %v1607_v21 = vld [vmem:[%s2695_s2 + $0x30] sm:$0xff]  ;;  %v2704_v34 = vsub.s32 0, %v1665_v31  ;;  %v2703_v39 = vsub.s32 1, %v1665_v31 }
  0x14   :  { %v1587_v18 = vld [vmem:[%s2695_s2 + $0x8] sm:$0xff]  ;;  %2722 = vst [vmem:[#allocation11_spill] sm:$0xff] %v1607_v21  ;;  %v1614_v22 = vld [vmem:[%s2695_s2 + $0x40] sm:$0xff]  ;;  %v1621_v23 = vld [vmem:[%s2695_s2 + $0x50] sm:$0xff]  ;;  %v2702_v56 = vsub.s32 2, %v1665_v31  ;;  %s1368_s9 = sld [smem:[#allocation2 + $0x4]] }
  0x15   :  { %66 = vperm.xlu1 %1382, %v48_v4   ;;  %90 = vperm.xlu0 %1383, %v48_v4   ;;  %2719 = vst [vmem:[#allocation8_spill] sm:$0xff] %v1587_v18  ;;  %2723 = vst [vmem:[#allocation12_spill] sm:$0xff] %v1614_v22  ;;  %v1628_v24 = vld [vmem:[%s2695_s2 + $0x60] sm:$0xff]  ;;  %v1635_v25 = vld [vmem:[%s2695_s2 + $0x70] sm:$0xff]  ;;  %s37_s0 = sld [smem:[#allocation2]]  ;;  %s1349_s16 = sshll.u32 %s1459_s15, 4  ;;  %s1350_s16 = int_to_ptr.vmem [resolvable:$true] %s1349_s16 }
  0x16   :  { %2724 = vst [vmem:[#allocation13_spill] sm:$0xff] %v1621_v23  ;;  %2725 = vst [vmem:[#allocation14_spill] sm:$0xff] %v1628_v24  ;;  %v44_v37 = vld [vmem:[%s2694_s1] sm:$0xf]  ;;  %s1367_s12 = sld [smem:[#allocation2 + $0x3]]  ;;  %s1427_s17 = scalar_lea.vmem %s1350_s16, 2048 }
  0x17   :  { %2726 = vst [vmem:[#allocation15_spill] sm:$0xff] %v1635_v25  ;;  %2727 = vst [vmem:[#allocation16_spill] sm:$0xff] %v1665_v31  ;;  %v1683_v38 = vrot.slane %v44_v37, %v2704_v34  ;;  %v1695_v43 = vrot.slane %v44_v37, %v2703_v39  ;;  %v1718_v58 = vrot.slane %v44_v37, %v2702_v56  ;;  %v1816_v34 = vld [vmem:[%s2697_s4] sm:$0x7f]  ;;  %s1365_s4 = sld [smem:[#allocation2 + $0x1]]  ;;  %p1428_p5 = scmp.ne.s32.totalorder %s1350_s16, %s1427_s17 }
  0x18   :  { %p1432_p6 = scmp.lt.s32.totalorder %s1350_s16, %s1350_s16  ;;  %p1433_p7 = scmp.lt.s32.totalorder %s1427_s17, %s1427_s17 }
  0x19   :  { %1384 = vset.pattern.permute.xlu1 %v1452_v2  ;;  %1388 = vset.pattern.permute.xlu0 %v1454_v6 }
  0x1a   :  { %82 = vperm.xlu1 %1384, %v1521_v5   ;;  %186 = vperm.xlu0 %1388, %v1511_v1   ;;  %p1434_p8 = por %p1433_p7, %p1432_p6 }
  0x1c   :  { %p1435_p9 = pnand %p1434_p8, %p1428_p5 }
  0x1e   :  { %86 = vperm.xlu1 %1384, %v47_v0   ;;  %198 = vperm.xlu0 %1388, %v48_v4  }
  0x22   :  { %1385 = vset.pattern.permute.xlu1 %v1455_v7  ;;  %1390 = vset.pattern.permute.xlu0 %v1455_v7 }
  0x23   :  { %98 = vperm.xlu1 %1385, %v1511_v1   ;;  %102 = vperm.xlu0 %1390, %v1521_v5  }
  0x27   :  { %106 = vperm.xlu1 %1385, %v47_v0   ;;  %352 = vperm.xlu0 %1390, %v1532_v8  }
  0x2b   :  { %110 = vperm.xlu1 %1385, %v48_v4   ;;  %364 = vperm.xlu0 %1390, %v1538_v9  }
  0x2f   :  { %1386 = vset.pattern.permute.xlu1 %v1456_v11  ;;  %372 = vperm.xlu0 %1390, %v1544_v10  }
  0x30   :  { %130 = vperm.xlu1 %1386, %v1521_v5  }
  0x33   :  { %380 = vperm.xlu0 %1390, %v1552_v12  }
  0x34   :  { %134 = vperm.xlu1 %1386, %v47_v0  }
  0x37   :  { %388 = vperm.xlu0 %1390, %v1558_v13  }
  0x38   :  { %1387 = vset.pattern.permute.xlu1 %v1457_v14 }
  0x39   :  { %154 = vperm.xlu1 %1387, %v1511_v1  }
  0x3b   :  { %396 = vperm.xlu0 %1390, %v1565_v15  }
  0x3d   :  { %162 = vperm.xlu1 %1387, %v47_v0  }
  0x3f   :  { %404 = vperm.xlu0 %1390, %v1572_v16  }
  0x41   :  { %166 = vperm.xlu1 %1387, %v48_v4  }
  0x43   :  { %412 = vperm.xlu0 %1390, %v1578_v17  }
  0x45   :  { %1389 = vset.pattern.permute.xlu1 %v1454_v6 }
  0x46   :  { %190 = vperm.xlu1 %1389, %v1521_v5  }
  0x47   :  { %1393 = vset.pattern.permute.xlu0 %v1456_v11 }
  0x48   :  { %126 = vperm.xlu0 %1393, %v1511_v1  }
  0x4a   :  { %194 = vperm.xlu1 %1389, %v47_v0   ;;  %v2701_v0 = vsub.s32 3, %v1665_v31 }
  0x4c   :  { %138 = vperm.xlu0 %1393, %v48_v4   ;;  %v1736_v4 = vrot.slane %v44_v37, %v2701_v0 }
  0x4e   :  { %1391 = vset.pattern.permute.xlu1 %v1453_v3 }
  0x4f   :  { %233 = vperm.xlu1 %1391, %v1532_v8  }
  0x50   :  { %456 = vperm.xlu0 %1393, %v1587_v18  }
  0x53   :  { %243 = vperm.xlu1 %1391, %v1595_v19  }
  0x54   :  { %468 = vperm.xlu0 %1393, %v1600_v20  }
  0x57   :  { %248 = vperm.xlu1 %1391, %v1538_v9  }
  0x58   :  { %476 = vperm.xlu0 %1393, %v1607_v21  }
  0x5b   :  { %258 = vperm.xlu1 %1391, %v1544_v10  }
  0x5c   :  { %484 = vperm.xlu0 %1393, %v1614_v22  }
  0x5f   :  { %268 = vperm.xlu1 %1391, %v1552_v12  }
  0x60   :  { %492 = vperm.xlu0 %1393, %v1621_v23  }
  0x63   :  { %278 = vperm.xlu1 %1391, %v1558_v13  }
  0x64   :  { %500 = vperm.xlu0 %1393, %v1628_v24  }
  0x67   :  { %288 = vperm.xlu1 %1391, %v1565_v15  }
  0x68   :  { %508 = vperm.xlu0 %1393, %v1635_v25  }
  0x6b   :  { %298 = vperm.xlu1 %1391, %v1572_v16  }
  0x6c   :  { %1395 = vset.pattern.permute.xlu0 %v1457_v14 }
  0x6d   :  { %158 = vperm.xlu0 %1395, %v1521_v5  }
  0x6f   :  { %308 = vperm.xlu1 %1391, %v1578_v17  }
  0x71   :  { %552 = vperm.xlu0 %1395, %v1532_v8  }
  0x73   :  { %1392 = vset.pattern.permute.xlu1 %v1455_v7 }
  0x74   :  { %356 = vperm.xlu1 %1392, %v1587_v18  }
  0x75   :  { %564 = vperm.xlu0 %1395, %v1538_v9  }
  0x78   :  { %360 = vperm.xlu1 %1392, %v1595_v19  }
  0x79   :  { %572 = vperm.xlu0 %1395, %v1544_v10  }
  0x7c   :  { %368 = vperm.xlu1 %1392, %v1600_v20  }
  0x7d   :  { %580 = vperm.xlu0 %1395, %v1552_v12  }
  0x80   :  { %376 = vperm.xlu1 %1392, %v1607_v21  }
  0x81   :  { %588 = vperm.xlu0 %1395, %v1558_v13  }
  0x84   :  { %384 = vperm.xlu1 %1392, %v1614_v22  }
  0x85   :  { %596 = vperm.xlu0 %1395, %v1565_v15  }
  0x88   :  { %392 = vperm.xlu1 %1392, %v1621_v23  }
  0x89   :  { %604 = vperm.xlu0 %1395, %v1572_v16  }
  0x8c   :  { %v62_v26 = vpop.permute.xlu1 %61  ;;  %400 = vperm.xlu1 %1392, %v1628_v24   ;;  %v1658_v27 = vpop.permute.xlu0 %78 }
  0x8d   :  { %612 = vperm.xlu0 %1395, %v1578_v17   ;;  %v75_v42 = vmul.f32 %v1683_v38, %v62_v26 }
  0x90   :  { %v67_v28 = vpop.permute.xlu1 %66  ;;  %408 = vperm.xlu1 %1392, %v1635_v25   ;;  %v91_v29 = vpop.permute.xlu0 %90 }
  0x91   :  { %1397 = vset.pattern.permute.xlu0 %v1453_v3  ;;  %v76_v46 = vmul.f32 %v1683_v38, %v67_v28 }
  0x92   :  { %51 = vperm.xlu0 %1397, %v1511_v1  }
  0x93   :  { %v96_v52 = vadd.f32 %v91_v29, %v76_v46 }
  0x94   :  { %1394 = vset.pattern.permute.xlu1 %v1456_v11 }
  0x95   :  { %v1667_v32 = vpop.permute.xlu1 %82  ;;  %452 = vperm.xlu1 %1394, %v1532_v8   ;;  %v1670_v33 = vpop.permute.xlu0 %186 }
  0x96   :  { %56 = vperm.xlu0 %1397, %v1521_v5  }
  0x99   :  { %v87_v35 = vpop.permute.xlu1 %86  ;;  %460 = vperm.xlu1 %1394, %v1595_v19   ;;  %v1675_v36 = vpop.permute.xlu0 %198 }
  0x9a   :  { %238 = vperm.xlu0 %1397, %v1587_v18   ;;  %v95_v47 = vadd.f32 %v87_v35, %v75_v42 }
  0x9d   :  { %464 = vperm.xlu1 %1394, %v1538_v9  }
  0x9e   :  { %v1687_v40 = vpop.permute.xlu1 %98  ;;  %253 = vperm.xlu0 %1397, %v1600_v20   ;;  %v1690_v41 = vpop.permute.xlu0 %102 }
  0xa1   :  { %472 = vperm.xlu1 %1394, %v1544_v10  }
  0xa2   :  { %v107_v44 = vpop.permute.xlu1 %106  ;;  %263 = vperm.xlu0 %1397, %v1607_v21   ;;  %v1699_v45 = vpop.permute.xlu0 %352 }
  0xa3   :  { %v119_v48 = vmul.f32 %v1695_v43, %v107_v44 }
  0xa5   :  { %v123_v49 = vadd.f32 %v119_v48, %v95_v47  ;;  %480 = vperm.xlu1 %1394, %v1552_v12  }
  0xa6   :  { %v111_v50 = vpop.permute.xlu1 %110  ;;  %273 = vperm.xlu0 %1397, %v1614_v22   ;;  %v1705_v51 = vpop.permute.xlu0 %364 }
  0xa7   :  { %v120_v53 = vmul.f32 %v1695_v43, %v111_v50 }
  0xa9   :  { %v124_v54 = vadd.f32 %v120_v53, %v96_v52  ;;  %488 = vperm.xlu1 %1394, %v1558_v13  }
  0xaa   :  { %283 = vperm.xlu0 %1397, %v1621_v23   ;;  %v1710_v55 = vpop.permute.xlu0 %372 }
  0xab   :  { %v1713_v57 = vpop.permute.xlu1 %130 }
  0xad   :  { %496 = vperm.xlu1 %1394, %v1565_v15  }
  0xae   :  { %293 = vperm.xlu0 %1397, %v1628_v24   ;;  %v1721_v59 = vpop.permute.xlu0 %380 }
  0xaf   :  { %v135_v60 = vpop.permute.xlu1 %134 }
  0xb0   :  { %v147_v61 = vmul.f32 %v1718_v58, %v135_v60 }
  0xb1   :  { %504 = vperm.xlu1 %1394, %v1572_v16  }
  0xb2   :  { %v151_v62 = vadd.f32 %v147_v61, %v123_v49  ;;  %303 = vperm.xlu0 %1397, %v1635_v25   ;;  %v1726_v63 = vpop.permute.xlu0 %388 }
  0xb4   :  { %v1729_v1 = vpop.permute.xlu1 %154 }
  0xb5   :  { %512 = vperm.xlu1 %1394, %v1578_v17  }
  0xb6   :  { %v1732_v2 = vpop.permute.xlu0 %396 }
  0xb8   :  { %v163_v5 = vpop.permute.xlu1 %162 }
  0xb9   :  { %v175_v6 = vmul.f32 %v1736_v4, %v163_v5  ;;  %1396 = vset.pattern.permute.xlu1 %v1457_v14 }
  0xba   :  { %556 = vperm.xlu1 %1396, %v1587_v18   ;;  %v1741_v7 = vpop.permute.xlu0 %404 }
  0xbb   :  { %v1743_v8 = vadd.f32 %v175_v6, %v151_v62 }
  0xbc   :  { %v167_v9 = vpop.permute.xlu1 %166 }
  0xbd   :  { %v176_v16 = vmul.f32 %v1736_v4, %v167_v9  ;;  %vm183_vm4 = vcmp.gt.f32.partialorder %v1743_v8, 0.0 }
  0xbe   :  { %560 = vperm.xlu1 %1396, %v1595_v19   ;;  %v1746_v10 = vpop.permute.xlu0 %412 }
  0xc1   :  { %v1748_v11 = vpop.permute.xlu1 %190 }
  0xc2   :  { %568 = vperm.xlu1 %1396, %v1600_v20  }
  0xc3   :  { %v1751_v12 = vpop.permute.xlu0 %126 }
  0xc5   :  { %v1753_v13 = vpop.permute.xlu1 %194 }
  0xc6   :  { %576 = vperm.xlu1 %1396, %v1607_v21  }
  0xc7   :  { %v139_v14 = vpop.permute.xlu0 %138 }
  0xc8   :  { %v148_v15 = vmul.f32 %v1718_v58, %v139_v14 }
  0xca   :  { %v152_v17 = vadd.f32 %v148_v15, %v124_v54  ;;  %584 = vperm.xlu1 %1396, %v1614_v22   ;;  %v234_v26 = vpop.permute.xlu1 %233  ;;  %v333_v22 = vsub.s32 4, %v1665_v31 }
  0xcb   :  { %v1759_v28 = vpop.permute.xlu0 %456 }
  0xcc   :  { %2728 = vst [vmem:[#allocation17_spill] sm:$0xff] %v1759_v28  ;;  %v1761_v29 = vadd.f32 %v176_v16, %v152_v17  ;;  %v1831_v19 = vrot.slane %v1816_v34, %v333_v22  ;;  %v2743_v22 = vsub.s32 2, %v1665_v31 }
  0xce   :  { %592 = vperm.xlu1 %1396, %v1621_v23   ;;  %v1764_v30 = vpop.permute.xlu1 %243  ;;  %vm184_vm2 = vcmp.gt.f32.partialorder %v1761_v29, 0.0 }
  0xcf   :  { %v1766_v35 = vpop.permute.xlu0 %468 }
  0xd0   :  { %2729 = vst [vmem:[#allocation18_spill] sm:$0xff] %v1766_v35  ;;  %v117_v35 = vmul.f32 %v1695_v43, %v1687_v40  ;;  %v118_v40 = vmul.f32 %v1695_v43, %v1690_v41  ;;  %v146_v43 = vmul.f32 %v1718_v58, %v1713_v57 }
  0xd2   :  { %600 = vperm.xlu1 %1396, %v1628_v24   ;;  %v249_v37 = vpop.permute.xlu1 %248  ;;  %v2739_v24 = vsub.s32 0, %v1665_v31 }
  0xd3   :  { %v1769_v42 = vpop.permute.xlu0 %476 }
  0xd4   :  { %2730 = vst [vmem:[#allocation19_spill] sm:$0xff] %v1769_v42  ;;  %v1823_v23 = vrot.slane %v1816_v34, %v2739_v24  ;;  %v1848_v42 = vrot.slane %v1816_v34, %v2743_v22  ;;  %v669_v22 = vsub.s32 5, %v1665_v31 }
  0xd6   :  { %608 = vperm.xlu1 %1396, %v1635_v25   ;;  %v259_v44 = vpop.permute.xlu1 %258  ;;  %v315_v18 = vmul.f32 %v1823_v23, %v234_v26  ;;  %v2744_v26 = vsub.s32 3, %v1665_v31  ;;  %v1879_v41 = vrot.slane %v1816_v34, %v669_v22 }
  0xd7   :  { %v1772_v46 = vpop.permute.xlu0 %484 }
  0xd8   :  { %2731 = vst [vmem:[#allocation20_spill] sm:$0xff] %v1772_v46  ;;  %v335_v24 = vadd.f32 %v1831_v19, %v315_v18 }
  0xda   :  { %v1774_v47 = vpop.permute.xlu1 %268  ;;  %1398 = vset.pattern.permute.xlu1 %v1453_v3 }
  0xdb   :  { %v1777_v48 = vpop.permute.xlu0 %492 }
  0xdc   :  { %2732 = vst [vmem:[#allocation21_spill] sm:$0xff] %v1777_v48 }
  0xde   :  { %v1779_v49 = vpop.permute.xlu1 %278 }
  0xdf   :  { %v1781_v50 = vpop.permute.xlu0 %500 }
  0xe0   :  { %2733 = vst [vmem:[#allocation22_spill] sm:$0xff] %v1781_v50  ;;  %v2742_v50 = vsub.s32 1, %v1665_v31 }
  0xe2   :  { %v1783_v52 = vpop.permute.xlu1 %288  ;;  %v1837_v48 = vrot.slane %v1816_v34, %v2742_v50  ;;  %v1853_v50 = vrot.slane %v1816_v34, %v2744_v26 }
  0xe3   :  { %v1785_v53 = vpop.permute.xlu0 %508 }
  0xe4   :  { %v428_v29 = vmul.f32 %v1837_v48, %v1726_v63 }
  0xe6   :  { %v1787_v54 = vpop.permute.xlu1 %298 }
  0xe8   :  { %v159_v60 = vpop.permute.xlu0 %158 }
  0xea   :  { %v1789_v61 = vpop.permute.xlu1 %308 }
  0xec   :  { %v553_v62 = vpop.permute.xlu0 %552 }
  0xef   :  { %v1791_v5 = vpop.permute.xlu1 %356 }
  0xf0   :  { %v1793_v6 = vpop.permute.xlu0 %564 }
  0xf3   :  { %v1795_v3 = vpop.permute.xlu1 %360 }
  0xf4   :  { %2734 = vst [vmem:[#allocation23_spill] sm:$0xff] %v1795_v3  ;;  %v1797_v9 = vpop.permute.xlu0 %572 }
  0xf7   :  { %v1799_v14 = vpop.permute.xlu1 %368 }
  0xf8   :  { %2735 = vst [vmem:[#allocation24_spill] sm:$0xff] %v1799_v14  ;;  %v1801_v15 = vpop.permute.xlu0 %580 }
  0xfb   :  { %v1803_v16 = vpop.permute.xlu1 %376 }
  0xfc   :  { %2736 = vst [vmem:[#allocation25_spill] sm:$0xff] %v1803_v16  ;;  %v1805_v17 = vpop.permute.xlu0 %588 }
  0xff   :  { %v1807_v0 = vpop.permute.xlu1 %384 }
 0x100   :  { %2737 = vst [vmem:[#allocation26_spill] sm:$0xff] %v1807_v0  ;;  %v1809_v56 = vpop.permute.xlu0 %596 }
 0x103   :  { %v1811_v39 = vpop.permute.xlu1 %392 }
 0x104   :  { %2738 = vst [vmem:[#allocation27_spill] sm:$0xff] %v1811_v39  ;;  %v1818_v25 = vpop.permute.xlu0 %604 }
 0x107   :  { %v1826_v21 = vpop.permute.xlu1 %400 }
 0x108   :  { %2740 = vst [vmem:[#allocation28_spill] sm:$0xff] %v1826_v21  ;;  %v1828_v20 = vpop.permute.xlu0 %612  ;;  %v419_v21 = vmul.f32 %v1837_v48, %v1699_v45 }
 0x109   :  { %2741 = vst [vmem:[#allocation29_spill] sm:$0xff] %v1828_v20  ;;  %v145_v20 = vmul.f32 %v1718_v58, %v1751_v12 }
 0x10a   :  { %v435_v14 = vadd.f32 %v419_v21, %v335_v24  ;;  %v173_v21 = vmul.f32 %v1736_v4, %v1729_v1 }
 0x10b   :  { %v1839_v39 = vpop.permute.xlu1 %408 }
 0x10d   :  { %v52_v46 = vpop.permute.xlu0 %51 }
 0x10e   :  { %v73_v0 = vmul.f32 %v1683_v38, %v52_v46  ;;  %v318_v46 = vmul.f32 %v1823_v23, %v249_v37  ;;  %v320_v37 = vmul.f32 %v1823_v23, %v259_v44 }
 0x110   :  { %v93_v18 = vadd.f32 %v1658_v27, %v73_v0  ;;  %v453_v16 = vpop.permute.xlu1 %452  ;;  %v619_v27 = vmul.f32 %v1853_v50, %v553_v62  ;;  %v338_v12 = vadd.f32 %v1831_v19, %v318_v46  ;;  %v340_v44 = vadd.f32 %v1831_v19, %v320_v37 }
 0x111   :  { %v519_v45 = vmul.f32 %v1848_v42, %v453_v16  ;;  %v57_v28 = vpop.permute.xlu0 %56  ;;  %v322_v62 = vmul.f32 %v1823_v23, %v1774_v47 }
 0x112   :  { %v121_v3 = vadd.f32 %v117_v35, %v93_v18  ;;  %v74_v26 = vmul.f32 %v1683_v38, %v57_v28 }
 0x113   :  { %v535_v0 = vadd.f32 %v519_v45, %v435_v14 }
 0x114   :  { %v149_v16 = vadd.f32 %v145_v20, %v121_v3  ;;  %v94_v24 = vadd.f32 %v1667_v32, %v74_v26  ;;  %v1871_v31 = vpop.permute.xlu1 %460  ;;  %v422_v20 = vmul.f32 %v1837_v48, %v1705_v51  ;;  %v174_v3 = vmul.f32 %v1736_v4, %v159_v60 }
 0x115   :  { %v1874_v35 = vadd.f32 %v619_v27, %v535_v0  ;;  %v1876_v38 = vpop.permute.xlu0 %238  ;;  %v424_v51 = vmul.f32 %v1837_v48, %v1710_v55  ;;  %v622_v4 = vmul.f32 %v1853_v50, %v1793_v6  ;;  %v342_v26 = vadd.f32 %v1831_v19, %v322_v62 }
 0x116   :  { %v177_v1 = vadd.f32 %v173_v21, %v149_v16  ;;  %v122_v28 = vadd.f32 %v118_v40, %v94_v24  ;;  %v438_v46 = vadd.f32 %v422_v20, %v338_v12  ;;  %v324_v40 = vmul.f32 %v1823_v23, %v1779_v49 }
 0x117   :  { %v651_v32 = vmax.f32 %v1874_v35, 0.0  ;;  %v440_v0 = vadd.f32 %v424_v51, %v340_v44  ;;  %v426_v24 = vmul.f32 %v1837_v48, %v1721_v59  ;;  %v203_v12 = vsel %vm183_vm4, %v1753_v13, 0.0 }
 0x118   :  { %v150_v14 = vadd.f32 %v146_v43, %v122_v28  ;;  %v465_v18 = vpop.permute.xlu1 %464  ;;  %vm181_vm0 = vcmp.gt.f32.partialorder %v177_v1, 0.0  ;;  %v624_v43 = vmul.f32 %v1853_v50, %v1797_v9  ;;  %v204_v1 = vsel %vm184_vm2, %v1675_v36, 0.0 }
 0x119   :  { %v522_v45 = vmul.f32 %v1848_v42, %v465_v18  ;;  %v1891_v57 = vpop.permute.xlu0 %253  ;;  %v671_v58 = vmul.f32 %v1879_v41, %v651_v32  ;;  %v201_v55 = vsel %vm181_vm0, %v1670_v33, 0.0  ;;  %v326_v28 = vmul.f32 %v1823_v23, %v1783_v52 }
 0x11a   :  { %v178_v22 = vadd.f32 %v174_v3, %v150_v14  ;;  %v442_v32 = vadd.f32 %v426_v24, %v342_v26  ;;  %v344_v8 = vadd.f32 %v1831_v19, %v324_v40  ;;  %v626_v52 = vmul.f32 %v1853_v50, %v1801_v15 }
 0x11b   :  { %v538_v47 = vadd.f32 %v522_v45, %v438_v46  ;;  %v688_v60 = vsel %vm687_vm1, %v671_v58, 0.0  ;;  %v346_v46 = vadd.f32 %v1831_v19, %v326_v28  ;;  %v328_v45 = vmul.f32 %v1823_v23, %v1787_v54 }
 0x11c   :  { %vm182_vm3 = vcmp.gt.f32.partialorder %v178_v22, 0.0  ;;  %v473_v27 = vpop.permute.xlu1 %472  ;;  %689 = vadd.xlane.f32.xlu1 %v688_v60  ;;  %v444_v63 = vadd.f32 %v428_v29, %v344_v8  ;;  %v628_v60 = vmul.f32 %v1853_v50, %v1805_v17  ;;  %v317_v8 = vmul.f32 %v1823_v23, %v1764_v30 }
 0x11d   :  { %v202_v21 = vsel %vm182_vm3, %v1748_v11, 0.0  ;;  %v1905_v37 = vadd.f32 %v622_v4, %v538_v47  ;;  %v524_v6 = vmul.f32 %v1848_v42, %v473_v27  ;;  %v1908_v16 = vpop.permute.xlu0 %263  ;;  %v430_v47 = vmul.f32 %v1837_v48, %v1732_v2 }
 0x11e   :  { %v205_v49 = vadd.f32 %v202_v21, %v201_v55  ;;  %v348_v27 = vadd.f32 %v1831_v19, %v328_v45  ;;  %v330_v21 = vmul.f32 %v1823_v23, %v1789_v61  ;;  %v632_v29 = vmul.f32 %v1853_v50, %v1818_v25 }
 0x11f   :  { %v540_v33 = vadd.f32 %v524_v6, %v440_v0  ;;  %v654_v11 = vmax.f32 %v1905_v37, 0.0  ;;  %v446_v55 = vadd.f32 %v430_v47, %v346_v46  ;;  %v433_v30 = vmul.f32 %v1837_v48, %v1839_v39  ;;  %v2746_v39 = vld [vmem:[#allocation29_spill] sm:$0xff] }
 0x120   :  { %v206_v20 = vadd.f32 %v205_v49, %v203_v12  ;;  %v481_v59 = vpop.permute.xlu1 %480  ;;  %v432_v49 = vmul.f32 %v1837_v48, %v1741_v7  ;;  %v316_v12 = vmul.f32 %v1823_v23, %v1876_v38  ;;  %vm756_vm6 = vcmp.gt.f32.partialorder %v1905_v37, 0.0 }
 0x121   :  { %v1923_v44 = vadd.f32 %v624_v43, %v540_v33  ;;  %v526_v13 = vmul.f32 %v1848_v42, %v481_v59  ;;  %v1926_v9 = vpop.permute.xlu0 %273  ;;  %v674_v62 = vmul.f32 %v1879_v41, %v654_v11  ;;  %v630_v43 = vmul.f32 %v1853_v50, %v1809_v56 }
 0x122   :  { %v1931_v36 = vadd.f32 %v206_v20, %v204_v1  ;;  %v448_v28 = vadd.f32 %v432_v49, %v348_v27  ;;  %v350_v20 = vadd.f32 %v1831_v19, %v330_v21  ;;  %v434_v56 = vmul.f32 %v1837_v48, %v1746_v10 }
 0x123   :  { %v542_v3 = vadd.f32 %v526_v13, %v442_v32  ;;  %v697_v14 = vsel %vm687_vm1, %v674_v62, 0.0  ;;  %v656_v18 = vmax.f32 %v1923_v44, 0.0  ;;  %v336_v13 = vadd.f32 %v1831_v19, %v316_v12 }
 0x124   :  { %v489_v58 = vpop.permute.xlu1 %488  ;;  %698 = vadd.xlane.f32.xlu1 %v697_v14  ;;  %v420_v10 = vmul.f32 %v1837_v48, %v1791_v5  ;;  %v450_v25 = vadd.f32 %v434_v56, %v350_v20  ;;  %v319_v5 = vmul.f32 %v1823_v23, %v1891_v57  ;;  %v337_v21 = vadd.f32 %v1831_v19, %v317_v8 }
 0x125   :  { %v1940_v51 = vadd.f32 %v626_v52, %v542_v3  ;;  %v528_v22 = vmul.f32 %v1848_v42, %v489_v58  ;;  %v1943_v4 = vpop.permute.xlu0 %283  ;;  %v676_v15 = vmul.f32 %v1879_v41, %v656_v18  ;;  %v533_v18 = vmul.f32 %v1848_v42, %v1785_v53 }
 0x126   :  { %v436_v47 = vadd.f32 %v420_v10, %v336_v13  ;;  %v521_v57 = vmul.f32 %v1848_v42, %v1871_v31  ;;  %v321_v12 = vmul.f32 %v1823_v23, %v1908_v16  ;;  %v2750_v10 = vld [vmem:[#allocation25_spill] sm:$0xff]  ;;  %vm758_vm7 = vcmp.gt.f32.partialorder %v1923_v44, 0.0 }
 0x127   :  { %v544_v26 = vadd.f32 %v528_v22, %v444_v63  ;;  %v703_v54 = vsel %vm687_vm1, %v676_v15, 0.0  ;;  %v658_v40 = vmax.f32 %v1940_v51, 0.0  ;;  %v2745_v15 = vld [vmem:[#allocation23_spill] sm:$0xff]  ;;  %vm760_vm8 = vcmp.gt.f32.partialorder %v1940_v51, 0.0 }
 0x128   :  { %v497_v0 = vpop.permute.xlu1 %496  ;;  %704 = vadd.xlane.f32.xlu1 %v703_v54  ;;  %v421_v53 = vmul.f32 %v1837_v48, %v2745_v15  ;;  %v341_v13 = vadd.f32 %v1831_v19, %v321_v12  ;;  %vm753_vm13 = vcmp.gt.f32.partialorder %v1874_v35, 0.0 }
 0x129   :  { %v1955_v6 = vadd.f32 %v628_v60, %v544_v26  ;;  %v530_v2 = vmul.f32 %v1848_v42, %v497_v0  ;;  %v1958_v24 = vpop.permute.xlu0 %293  ;;  %v678_v17 = vmul.f32 %v1879_v41, %v658_v40  ;;  %v634_v26 = vmul.f32 %v1853_v50, %v2746_v39  ;;  %v2747_v0 = vld [vmem:[#allocation17_spill] sm:$0xff] }
 0x12a   :  { %v437_v20 = vadd.f32 %v421_v53, %v337_v21  ;;  %v325_v53 = vmul.f32 %v1823_v23, %v1943_v4 }
 0x12b   :  { %v546_v33 = vadd.f32 %v530_v2, %v446_v55  ;;  %v709_v61 = vsel %vm687_vm1, %v678_v17, 0.0  ;;  %v660_v11 = vmax.f32 %v1955_v6, 0.0  ;;  %v520_v55 = vmul.f32 %v1848_v42, %v2747_v0  ;;  %v2748_v2 = vld [vmem:[#allocation16_spill] sm:$0xff] }
 0x12c   :  { %v505_v1 = vpop.permute.xlu1 %504  ;;  %710 = vadd.xlane.f32.xlu1 %v709_v61  ;;  %v771_v17 = vsub.s32 6, %v2748_v2  ;;  %v537_v8 = vadd.f32 %v521_v57, %v437_v20  ;;  %vm762_vm9 = vcmp.gt.f32.partialorder %v1955_v6, 0.0 }
 0x12d   :  { %v1970_v59 = vadd.f32 %v630_v43, %v546_v33  ;;  %v532_v7 = vmul.f32 %v1848_v42, %v505_v1  ;;  %v304_v32 = vpop.permute.xlu0 %303  ;;  %v680_v38 = vmul.f32 %v1879_v41, %v660_v11  ;;  %v339_v11 = vadd.f32 %v1831_v19, %v319_v5 }
 0x12e   :  { %v329_v62 = vmul.f32 %v1823_v23, %v304_v32  ;;  %v536_v1 = vadd.f32 %v520_v55, %v436_v47  ;;  %v2023_v16 = vrot.slane %v1816_v34, %v771_v17  ;;  %v345_v17 = vadd.f32 %v1831_v19, %v325_v53  ;;  %v2758_v53 = vld [vmem:[#allocation22_spill] sm:$0xff] }
 0x12f   :  { %v548_v52 = vadd.f32 %v532_v7, %v448_v28  ;;  %v715_v3 = vsel %vm687_vm1, %v680_v38, 0.0  ;;  %v662_v14 = vmax.f32 %v1970_v59, 0.0  ;;  %v2749_v38 = vld [vmem:[#allocation24_spill] sm:$0xff]  ;;  %vm764_vm10 = vcmp.gt.f32.partialorder %v1970_v59, 0.0 }
 0x130   :  { %v349_v46 = vadd.f32 %v1831_v19, %v329_v62  ;;  %v513_v45 = vpop.permute.xlu1 %512  ;;  %716 = vadd.xlane.f32.xlu1 %v715_v3  ;;  %v423_v31 = vmul.f32 %v1837_v48, %v2749_v38  ;;  %v323_v62 = vmul.f32 %v1823_v23, %v1926_v9  ;;  %v776_v21 = vsel %vm756_vm6, %v2023_v16, 0.0 }
 0x131   :  { %v1991_v58 = vadd.f32 %v632_v29, %v548_v52  ;;  %v534_v63 = vmul.f32 %v1848_v42, %v513_v45  ;;  %v682_v22 = vmul.f32 %v1879_v41, %v662_v14  ;;  %v798_v38 = vsel %vm687_vm1, %v776_v21, 0.0 }
 0x132   :  { %v449_v60 = vadd.f32 %v433_v30, %v349_v46  ;;  %v439_v3 = vadd.f32 %v423_v31, %v339_v11  ;;  %v425_v30 = vmul.f32 %v1837_v48, %v2750_v10  ;;  %v2751_v46 = vld [vmem:[#allocation18_spill] sm:$0xff]  ;;  %v343_v15 = vadd.f32 %v1831_v19, %v323_v62  ;;  %v2757_v10 = vld [vmem:[#allocation28_spill] sm:$0xff] }
 0x133   :  { %v550_v54 = vadd.f32 %v534_v63, %v450_v25  ;;  %v721_v40 = vsel %vm687_vm1, %v682_v22, 0.0  ;;  %v664_v27 = vmax.f32 %v1991_v58, 0.0  ;;  %v523_v45 = vmul.f32 %v1848_v42, %v2751_v46 }
 0x134   :  { %722 = vadd.xlane.f32.xlu1 %v721_v40  ;;  %v2007_v49 = vadd.f32 %v533_v18, %v449_v60  ;;  %v441_v22 = vadd.f32 %v425_v30, %v341_v13  ;;  %v778_v44 = vsel %vm758_vm7, %v2023_v16, 0.0  ;;  %v431_v30 = vmul.f32 %v1837_v48, %v2757_v10 }
 0x135   :  { %v2013_v43 = vadd.f32 %v634_v26, %v550_v54  ;;  %v557_v33 = vpop.permute.xlu1 %556  ;;  %v684_v61 = vmul.f32 %v1879_v41, %v664_v27  ;;  %v539_v5 = vadd.f32 %v523_v45, %v439_v3  ;;  %v2752_v54 = vld [vmem:[#allocation19_spill] sm:$0xff]  ;;  %v2753_v27 = vld [vmem:[#allocation26_spill] sm:$0xff]  ;;  %v2756_v3 = vld [vmem:[#allocation21_spill] sm:$0xff]  ;;  %v780_v51 = vsel %vm760_vm8, %v2023_v16, 0.0 }
 0x136   :  { %v620_v28 = vmul.f32 %v1853_v50, %v557_v33  ;;  %v525_v40 = vmul.f32 %v1848_v42, %v2752_v54  ;;  %v427_v0 = vmul.f32 %v1837_v48, %v2753_v27  ;;  %v327_v33 = vmul.f32 %v1823_v23, %v1958_v24 }
 0x137   :  { %v727_v7 = vsel %vm687_vm1, %v684_v61, 0.0  ;;  %v666_v32 = vmax.f32 %v2013_v43, 0.0  ;;  %v782_v6 = vsel %vm762_vm9, %v2023_v16, 0.0  ;;  %vm766_vm11 = vcmp.gt.f32.partialorder %v1991_v58, 0.0 }
 0x138   :  { %v636_v56 = vadd.f32 %v620_v28, %v536_v1  ;;  %728 = vadd.xlane.f32.xlu1 %v727_v7  ;;  %v443_v2 = vadd.f32 %v427_v0, %v343_v15  ;;  %v541_v12 = vadd.f32 %v525_v40, %v441_v22  ;;  %v2754_v28 = vld [vmem:[#allocation20_spill] sm:$0xff]  ;;  %v2755_v7 = vld [vmem:[#allocation27_spill] sm:$0xff]  ;;  %v347_v13 = vadd.f32 %v1831_v19, %v327_v33 }
 0x139   :  { %v561_v29 = vpop.permute.xlu1 %560  ;;  %v686_v52 = vmul.f32 %v1879_v41, %v666_v32  ;;  %v527_v20 = vmul.f32 %v1848_v42, %v2754_v28  ;;  %v429_v32 = vmul.f32 %v1837_v48, %v2755_v7  ;;  %v810_v48 = vsel %vm687_vm1, %v780_v51, 0.0 }
 0x13a   :  { %v621_v14 = vmul.f32 %v1853_v50, %v561_v29  ;;  %v652_v18 = vmax.f32 %v636_v56, 0.0  ;;  %vm754_vm5 = vcmp.gt.f32.partialorder %v636_v56, 0.0  ;;  %vm768_vm12 = vcmp.gt.f32.partialorder %v2013_v43, 0.0 }
 0x13b   :  { %v733_v34 = vsel %vm687_vm1, %v686_v52, 0.0  ;;  %v774_v63 = vsel %vm754_vm5, %v2023_v16, 0.0  ;;  %v445_v24 = vadd.f32 %v429_v32, %v345_v17  ;;  %v788_v28 = vsel %vm768_vm12, %v2023_v16, 0.0 }
 0x13c   :  { %v2035_v25 = vadd.f32 %v621_v14, %v537_v8  ;;  %734 = vadd.xlane.f32.xlu1 %v733_v34  ;;  %v672_v9 = vmul.f32 %v1879_v41, %v652_v18  ;;  %v792_v55 = vsel %vm687_vm1, %v774_v63, 0.0  ;;  %v543_v8 = vadd.f32 %v527_v20, %v443_v2 }
 0x13d   :  { %v569_v47 = vpop.permute.xlu1 %568  ;;  %v529_v14 = vmul.f32 %v1848_v42, %v2756_v3  ;;  %v804_v18 = vsel %vm687_vm1, %v778_v44, 0.0  ;;  %v834_v20 = vsel %vm687_vm1, %v788_v28, 0.0  ;;  %v773_v43 = vsel %vm753_vm13, %v2023_v16, 0.0  ;;  %v2759_v44 = vld [vmem:[#allocation8_spill] sm:$0xff] }
 0x13e   :  { %v623_v60 = vmul.f32 %v1853_v50, %v569_v47  ;;  %v691_v39 = vsel %vm687_vm1, %v672_v9, 0.0  ;;  %v653_v26 = vmax.f32 %v2035_v25, 0.0  ;;  %v447_v9 = vadd.f32 %v431_v30, %v347_v13 }
 0x13f   :  { %692 = vadd.xlane.f32.xlu0 %v691_v39  ;;  %v545_v45 = vadd.f32 %v529_v14, %v445_v24  ;;  %v531_v47 = vmul.f32 %v1848_v42, %v2758_v53  ;;  %v816_v42 = vsel %vm687_vm1, %v782_v6, 0.0  ;;  %vm755_vm14 = vcmp.gt.f32.partialorder %v2035_v25, 0.0  ;;  %v2170_v53 = vld [vmem:[%s2695_s2] sm:$0xff]  ;;  %v2183_v6 = vld [vmem:[%s2695_s2 + $0x18] sm:$0xff] }
 0x140   :  { %v2051_v4 = vadd.f32 %v623_v60, %v539_v5  ;;  %793 = vadd.xlane.f32.xlu1 %v792_v55  ;;  %v673_v37 = vmul.f32 %v1879_v41, %v653_v26  ;;  %v789_v7 = vsel %vm687_vm1, %v773_v43, 0.0 }
 0x141   :  { %v577_v57 = vpop.permute.xlu1 %576  ;;  %v547_v26 = vadd.f32 %v531_v47, %v447_v9 }
 0x142   :  { %v625_v61 = vmul.f32 %v1853_v50, %v577_v57  ;;  %v694_v11 = vsel %vm687_vm1, %v673_v37, 0.0  ;;  %v655_v1 = vmax.f32 %v2051_v4, 0.0  ;;  %v784_v37 = vsel %vm764_vm10, %v2023_v16, 0.0 }
 0x143   :  { %695 = vadd.xlane.f32.xlu0 %v694_v11  ;;  %v822_v57 = vsel %vm687_vm1, %v784_v37, 0.0  ;;  %vm757_vm15 = vcmp.gt.f32.partialorder %v2051_v4, 0.0  ;;  %v2216_v37 = vld [vmem:[%s2695_s2 + $0x48] sm:$0xff] }
 0x144   :  { %v2067_v31 = vadd.f32 %v625_v61, %v541_v12  ;;  %799 = vadd.xlane.f32.xlu1 %v798_v38  ;;  %v675_v23 = vmul.f32 %v1879_v41, %v655_v1  ;;  %v786_v61 = vsel %vm766_vm11, %v2023_v16, 0.0  ;;  %v777_v32 = vsel %vm757_vm15, %v2023_v16, 0.0 }
 0x145   :  { %v585_v56 = vpop.permute.xlu1 %584  ;;  %v801_v38 = vsel %vm687_vm1, %v777_v32, 0.0 }
 0x146   :  { %v627_v62 = vmul.f32 %v1853_v50, %v585_v56  ;;  %v700_v29 = vsel %vm687_vm1, %v675_v23, 0.0  ;;  %v657_v52 = vmax.f32 %v2067_v31, 0.0  ;;  %vm759_vm0 = vcmp.gt.f32.partialorder %v2067_v31, 0.0  ;;  %v2760_v31 = vld [vmem:[#allocation9_spill] sm:$0xff] }
 0x147   :  { %701 = vadd.xlane.f32.xlu0 %v700_v29  ;;  %v2127_v23 = vstv %s1365_s4  ;;  %v779_v25 = vsel %vm759_vm0, %v2023_v16, 0.0  ;;  %v2761_v29 = vld [vmem:[#allocation10_spill] sm:$0xff] }
 0x148   :  { %v2081_v34 = vadd.f32 %v627_v62, %v543_v8  ;;  %805 = vadd.xlane.f32.xlu1 %v804_v18  ;;  %v677_v19 = vmul.f32 %v1879_v41, %v657_v52  ;;  %v922_v24 = vmul.f32 %v2127_v23, %v2759_v44  ;;  %v807_v4 = vsel %vm687_vm1, %v779_v25, 0.0  ;;  %v2762_v18 = vld [vmem:[#allocation11_spill] sm:$0xff] }
 0x149   :  { %v593_v46 = vpop.permute.xlu1 %592  ;;  %v923_v8 = vmul.f32 %v2127_v23, %v2760_v31  ;;  %v925_v52 = vmul.f32 %v2127_v23, %v2761_v29  ;;  %v927_v10 = vmul.f32 %v2127_v23, %v2762_v18 }
 0x14a   :  { %v629_v63 = vmul.f32 %v1853_v50, %v593_v46  ;;  %v706_v22 = vsel %vm687_vm1, %v677_v19, 0.0  ;;  %v659_v15 = vmax.f32 %v2081_v34, 0.0  ;;  %vm761_vm2 = vcmp.gt.f32.partialorder %v2081_v34, 0.0  ;;  %v2763_v19 = vld [vmem:[#allocation12_spill] sm:$0xff] }
 0x14b   :  { %707 = vadd.xlane.f32.xlu0 %v706_v22  ;;  %v781_v56 = vsel %vm761_vm2, %v2023_v16, 0.0  ;;  %v929_v51 = vmul.f32 %v2127_v23, %v2763_v19 }
 0x14c   :  { %v2092_v5 = vadd.f32 %v629_v63, %v545_v45  ;;  %811 = vadd.xlane.f32.xlu1 %v810_v48  ;;  %v679_v60 = vmul.f32 %v1879_v41, %v659_v15  ;;  %v813_v13 = vsel %vm687_vm1, %v781_v56, 0.0  ;;  %v2764_v45 = vld [vmem:[#allocation13_spill] sm:$0xff]  ;;  %v2765_v63 = vld [vmem:[#allocation14_spill] sm:$0xff]  ;;  %v2164_v48 = vstv %s1370_s23 }
 0x14d   :  { %v601_v39 = vpop.permute.xlu1 %600  ;;  %v931_v9 = vmul.f32 %v2127_v23, %v2764_v45  ;;  %v933_v22 = vmul.f32 %v2127_v23, %v2765_v63  ;;  %v1035_v47 = vmul.f32 %v2170_v53, %v2164_v48 }
 0x14e   :  { %v631_v54 = vmul.f32 %v1853_v50, %v601_v39  ;;  %v712_v40 = vsel %vm687_vm1, %v679_v60, 0.0  ;;  %v661_v27 = vmax.f32 %v2092_v5, 0.0  ;;  %vm763_vm3 = vcmp.gt.f32.partialorder %v2092_v5, 0.0 }
 0x14f   :  { %713 = vadd.xlane.f32.xlu0 %v712_v40  ;;  %v783_v62 = vsel %vm763_vm3, %v2023_v16, 0.0  ;;  %v921_v5 = vmul.f32 %v2170_v53, %v2127_v23  ;;  %v1037_v60 = vmul.f32 %v2164_v48, %v2760_v31  ;;  %v924_v39 = vmul.f32 %v2183_v6, %v2127_v23 }
 0x150   :  { %v647_v0 = vadd.f32 %v631_v54, %v547_v26  ;;  %817 = vadd.xlane.f32.xlu1 %v816_v42  ;;  %v681_v55 = vmul.f32 %v1879_v41, %v661_v27  ;;  %v819_v3 = vsel %vm687_vm1, %v783_v62, 0.0  ;;  %v1039_v26 = vmul.f32 %v2164_v48, %v2761_v29  ;;  %v2194_v54 = vld [vmem:[%s2695_s2 + $0x28] sm:$0xff]  ;;  %v2205_v42 = vld [vmem:[%s2695_s2 + $0x38] sm:$0xff] }
 0x151   :  { %v609_v21 = vpop.permute.xlu1 %608  ;;  %v926_v40 = vmul.f32 %v2194_v54, %v2127_v23  ;;  %v1041_v27 = vmul.f32 %v2164_v48, %v2762_v18  ;;  %v1040_v44 = vmul.f32 %v2194_v54, %v2164_v48  ;;  %v1042_v56 = vmul.f32 %v2205_v42, %v2164_v48 }
 0x152   :  { %v633_v59 = vmul.f32 %v1853_v50, %v609_v21  ;;  %v718_v2 = vsel %vm687_vm1, %v681_v55, 0.0  ;;  %v663_v17 = vmax.f32 %v647_v0, 0.0  ;;  %v828_v50 = vsel %vm687_vm1, %v786_v61, 0.0 }
 0x153   :  { %719 = vadd.xlane.f32.xlu0 %v718_v2  ;;  %vm765_vm4 = vcmp.gt.f32.partialorder %v647_v0, 0.0  ;;  %v928_v0 = vmul.f32 %v2205_v42, %v2127_v23  ;;  %v1043_v55 = vmul.f32 %v2164_v48, %v2763_v19  ;;  %v930_v21 = vmul.f32 %v2216_v37, %v2127_v23  ;;  %v2227_v2 = vld [vmem:[%s2695_s2 + $0x58] sm:$0xff] }
 0x154   :  { %v649_v12 = vadd.f32 %v633_v59, %v2007_v49  ;;  %823 = vadd.xlane.f32.xlu1 %v822_v57  ;;  %v683_v33 = vmul.f32 %v1879_v41, %v663_v17  ;;  %v785_v14 = vsel %vm765_vm4, %v2023_v16, 0.0  ;;  %v1045_v59 = vmul.f32 %v2164_v48, %v2764_v45  ;;  %v2235_v57 = vld [vmem:[%s2695_s2 + $0x60] sm:$0xff] }
 0x155   :  { %v825_v30 = vsel %vm687_vm1, %v785_v14, 0.0  ;;  %v932_v17 = vmul.f32 %v2227_v2, %v2127_v23 }
 0x156   :  { %v724_v11 = vsel %vm687_vm1, %v683_v33, 0.0  ;;  %v665_v58 = vmax.f32 %v649_v12, 0.0  ;;  %vm767_vm5 = vcmp.gt.f32.partialorder %v649_v12, 0.0  ;;  %v1047_v12 = vmul.f32 %v2235_v57, %v2164_v48 }
 0x157   :  { %725 = vadd.xlane.f32.xlu0 %v724_v11  ;;  %v787_v34 = vsel %vm767_vm5, %v2023_v16, 0.0  ;;  %v2239_v33 = vstv %s1368_s9  ;;  %v2245_v11 = vld [vmem:[%s2695_s2 + $0x68] sm:$0xff] }
 0x158   :  { %829 = vadd.xlane.f32.xlu1 %v828_v50  ;;  %v685_v1 = vmul.f32 %v1879_v41, %v665_v58  ;;  %v775_v41 = vsel %vm755_vm14, %v2023_v16, 0.0  ;;  %v831_v46 = vsel %vm687_vm1, %v787_v34, 0.0  ;;  %v2766_v16 = vld [vmem:[#allocation15_spill] sm:$0xff]  ;;  %v934_v58 = vmul.f32 %v2245_v11, %v2127_v23  ;;  %v2253_v50 = vld [vmem:[%s2695_s2 + $0x70] sm:$0xff] }
 0x159   :  { %v795_v35 = vsel %vm687_vm1, %v775_v41, 0.0  ;;  %v935_v15 = vmul.f32 %v2127_v23, %v2766_v16  ;;  %v1048_v18 = vmul.f32 %v2245_v11, %v2164_v48  ;;  %v2356_v34 = vstv %s37_s0  ;;  %s1366_s0 = sld [smem:[#allocation2 + $0x2]] }
 0x15a   :  { %v730_v49 = vsel %vm687_vm1, %v685_v1, 0.0  ;;  %vm1131_vm1 = vcmask 7168   ;;  %v1049_v1 = vmul.f32 %v2253_v50, %v2164_v48 }
 0x15b   :  { %731 = vadd.xlane.f32.xlu0 %v730_v49  ;;  %v2269_v49 = vld [vmem:[%s2695_s2 + $0x78] sm:$0xff] }
 0x15c   :  { %835 = vadd.xlane.f32.xlu1 %v834_v20  ;;  %v936_v20 = vmul.f32 %v2269_v49, %v2127_v23 }
 0x15f   :  { %790 = vadd.xlane.f32.xlu0 %v789_v7  ;;  %v2278_v7 = vld [vmem:[%s2695_s2 + $0x8] sm:$0xff] }
 0x160   :  { %v1036_v41 = vmul.f32 %v2278_v7, %v2164_v48  ;;  %v839_v45 = vmul.f32 %v2278_v7, %v2356_v34 }
 0x163   :  { %796 = vadd.xlane.f32.xlu0 %v795_v35 }
 0x167   :  { %802 = vadd.xlane.f32.xlu0 %v801_v38  ;;  %v1038_v38 = vmul.f32 %v2183_v6, %v2164_v48 }
 0x16b   :  { %808 = vadd.xlane.f32.xlu0 %v807_v4 }
 0x16d   :  { %955 = vrot.lane.b32.xlu1 %v922_v24, %s1458_s22 }
 0x16f   :  { %814 = vadd.xlane.f32.xlu0 %v813_v13  ;;  %v1044_v13 = vmul.f32 %v2216_v37, %v2164_v48 }
 0x171   :  { %957 = vrot.lane.b32.xlu1 %v923_v8, %s1458_s22 }
 0x173   :  { %820 = vadd.xlane.f32.xlu0 %v819_v3 }
 0x175   :  { %961 = vrot.lane.b32.xlu1 %v925_v52, %s1458_s22  ;;  %v1046_v52 = vmul.f32 %v2227_v2, %v2164_v48 }
 0x177   :  { %826 = vadd.xlane.f32.xlu0 %v825_v30 }
 0x179   :  { %965 = vrot.lane.b32.xlu1 %v927_v10, %s1458_s22 }
 0x17b   :  { %832 = vadd.xlane.f32.xlu0 %v831_v46  ;;  %v1050_v46 = vmul.f32 %v2269_v49, %v2164_v48 }
 0x17d   :  { %969 = vrot.lane.b32.xlu1 %v929_v51, %s1458_s22 }
 0x181   :  { %973 = vrot.lane.b32.xlu1 %v931_v9, %s1458_s22 }
 0x185   :  { %977 = vrot.lane.b32.xlu1 %v933_v22, %s1458_s22 }
 0x189   :  { %981 = vrot.lane.b32.xlu1 %v935_v15, %s1458_s22  ;;  %v841_v15 = vmul.f32 %v2183_v6, %v2356_v34 }
 0x18d   :  { %1067 = vrot.lane.b32.xlu1 %v1035_v47, %s1458_s22 }
 0x191   :  { %953 = vrot.lane.b32.xlu0 %v921_v5, %s1458_s22  ;;  %1071 = vrot.lane.b32.xlu1 %v1037_v60, %s1458_s22 }
 0x195   :  { %959 = vrot.lane.b32.xlu0 %v924_v39, %s1458_s22  ;;  %1075 = vrot.lane.b32.xlu1 %v1039_v26, %s1458_s22  ;;  %v843_v39 = vmul.f32 %v2194_v54, %v2356_v34 }
 0x199   :  { %963 = vrot.lane.b32.xlu0 %v926_v40, %s1458_s22  ;;  %1079 = vrot.lane.b32.xlu1 %v1041_v27, %s1458_s22 }
 0x19d   :  { %967 = vrot.lane.b32.xlu0 %v928_v0, %s1458_s22  ;;  %1083 = vrot.lane.b32.xlu1 %v1043_v55, %s1458_s22  ;;  %v845_v55 = vmul.f32 %v2205_v42, %v2356_v34 }
 0x1a1   :  { %971 = vrot.lane.b32.xlu0 %v930_v21, %s1458_s22  ;;  %1087 = vrot.lane.b32.xlu1 %v1045_v59, %s1458_s22 }
 0x1a5   :  { %v690_v61 = vpop.xlane.xlu1 %689  ;;  %975 = vrot.lane.b32.xlu0 %v932_v17, %s1458_s22  ;;  %1091 = vrot.lane.b32.xlu1 %v1047_v12, %s1458_s22 }
 0x1a6   :  { %v2258_v28 = vadd.f32 %v2239_v33, %v690_v61  ;;  %v847_v61 = vmul.f32 %v2216_v37, %v2356_v34 }
 0x1a8   :  { %1132 = vst.msk [vmem:[%s2698_s5] sm:$0xff] %vm1131_vm1, %v2258_v28 }
 0x1a9   :  { %979 = vrot.lane.b32.xlu0 %v934_v58, %s1458_s22  ;;  %1095 = vrot.lane.b32.xlu1 %v1049_v1, %s1458_s22 }
 0x1ad   :  { %v699_v43 = vpop.xlane.xlu1 %698  ;;  %983 = vrot.lane.b32.xlu0 %v936_v20, %s1458_s22 }
 0x1ae   :  { %v2283_v35 = vadd.f32 %v2239_v33, %v699_v43 }
 0x1b0   :  { %1135 = vst.msk [vmem:[%s2698_s5 + $0x18] sm:$0xff] %vm1131_vm1, %v2283_v35 }
 0x1b1   :  { %v705_v32 = vpop.xlane.xlu1 %704  ;;  %1069 = vrot.lane.b32.xlu0 %v1036_v41, %s1458_s22  ;;  %v849_v41 = vmul.f32 %v2227_v2, %v2356_v34 }
 0x1b2   :  { %v2294_v23 = vadd.f32 %v2239_v33, %v705_v32 }
 0x1b4   :  { %1137 = vst.msk [vmem:[%s2698_s5 + $0x28] sm:$0xff] %vm1131_vm1, %v2294_v23 }
 0x1b5   :  { %v711_v25 = vpop.xlane.xlu1 %710  ;;  %1073 = vrot.lane.b32.xlu0 %v1038_v38, %s1458_s22 }
 0x1b6   :  { %v2305_v24 = vadd.f32 %v2239_v33, %v711_v25 }
 0x1b8   :  { %1139 = vst.msk [vmem:[%s2698_s5 + $0x38] sm:$0xff] %vm1131_vm1, %v2305_v24 }
 0x1b9   :  { %v717_v4 = vpop.xlane.xlu1 %716  ;;  %1077 = vrot.lane.b32.xlu0 %v1040_v44, %s1458_s22  ;;  %v853_v44 = vmul.f32 %v2269_v49, %v2356_v34 }
 0x1ba   :  { %v2316_v31 = vadd.f32 %v2239_v33, %v717_v4 }
 0x1bc   :  { %1141 = vst.msk [vmem:[%s2698_s5 + $0x48] sm:$0xff] %vm1131_vm1, %v2316_v31 }
 0x1bd   :  { %v723_v8 = vpop.xlane.xlu1 %722  ;;  %1081 = vrot.lane.b32.xlu0 %v1042_v56, %s1458_s22  ;;  %v851_v56 = vmul.f32 %v2245_v11, %v2356_v34 }
 0x1be   :  { %v2327_v62 = vadd.f32 %v2239_v33, %v723_v8 }
 0x1c0   :  { %1143 = vst.msk [vmem:[%s2698_s5 + $0x58] sm:$0xff] %vm1131_vm1, %v2327_v62 }
 0x1c1   :  { %v729_v29 = vpop.xlane.xlu1 %728  ;;  %1085 = vrot.lane.b32.xlu0 %v1044_v13, %s1458_s22 }
 0x1c2   :  { %v2338_v3 = vadd.f32 %v2239_v33, %v729_v29 }
 0x1c4   :  { %1145 = vst.msk [vmem:[%s2698_s5 + $0x68] sm:$0xff] %vm1131_vm1, %v2338_v3 }
 0x1c5   :  { %v735_v14 = vpop.xlane.xlu1 %734  ;;  %1089 = vrot.lane.b32.xlu0 %v1046_v52, %s1458_s22  ;;  %v838_v52 = vmul.f32 %v2170_v53, %v2356_v34 }
 0x1c6   :  { %v2349_v10 = vadd.f32 %v2239_v33, %v735_v14 }
 0x1c8   :  { %1147 = vst.msk [vmem:[%s2698_s5 + $0x78] sm:$0xff] %vm1131_vm1, %v2349_v10  ;;  %v693_v30 = vpop.xlane.xlu0 %692 }
 0x1c9   :  { %v2359_v19 = vadd.f32 %v2239_v33, %v693_v30  ;;  %v794_v51 = vpop.xlane.xlu1 %793  ;;  %1093 = vrot.lane.b32.xlu0 %v1048_v18, %s1458_s22 }
 0x1ca   :  { %v855_v16 = vadd.f32 %v839_v45, %v794_v51 }
 0x1cb   :  { %1133 = vst.msk [vmem:[%s2698_s5 + $0x8] sm:$0xff] %vm1131_vm1, %v2359_v19 }
 0x1cc   :  { %v696_v9 = vpop.xlane.xlu0 %695 }
 0x1cd   :  { %v2372_v63 = vadd.f32 %v2239_v33, %v696_v9  ;;  %v800_v22 = vpop.xlane.xlu1 %799  ;;  %1097 = vrot.lane.b32.xlu0 %v1050_v46, %s1458_s22 }
 0x1ce   :  { %v857_v60 = vadd.f32 %v841_v15, %v800_v22  ;;  %v2468_v15 = vld [vmem:[%s2695_s2 + $0x20] sm:$0xff] }
 0x1cf   :  { %1134 = vst.msk [vmem:[%s2698_s5 + $0x10] sm:$0xff] %vm1131_vm1, %v2372_v63 }
 0x1d0   :  { %v702_v48 = vpop.xlane.xlu0 %701 }
 0x1d1   :  { %v2383_v47 = vadd.f32 %v2239_v33, %v702_v48  ;;  %v806_v5 = vpop.xlane.xlu1 %805  ;;  %1166 = vrot.lane.b32.xlu0 %v855_v16, %s1458_s22  ;;  %v842_v48 = vmul.f32 %v2468_v15, %v2356_v34 }
 0x1d2   :  { %v859_v0 = vadd.f32 %v843_v39, %v806_v5 }
 0x1d3   :  { %1136 = vst.msk [vmem:[%s2698_s5 + $0x20] sm:$0xff] %vm1131_vm1, %v2383_v47 }
 0x1d4   :  { %v708_v26 = vpop.xlane.xlu0 %707 }
 0x1d5   :  { %v2394_v40 = vadd.f32 %v2239_v33, %v708_v26  ;;  %v812_v27 = vpop.xlane.xlu1 %811  ;;  %1170 = vrot.lane.b32.xlu0 %v857_v60, %s1458_s22  ;;  %v2478_v26 = vld [vmem:[%s2695_s2 + $0x30] sm:$0xff] }
 0x1d6   :  { %v861_v12 = vadd.f32 %v845_v55, %v812_v27  ;;  %v844_v27 = vmul.f32 %v2478_v26, %v2356_v34 }
 0x1d7   :  { %1138 = vst.msk [vmem:[%s2698_s5 + $0x30] sm:$0xff] %vm1131_vm1, %v2394_v40 }
 0x1d8   :  { %v714_v21 = vpop.xlane.xlu0 %713 }
 0x1d9   :  { %v2405_v59 = vadd.f32 %v2239_v33, %v714_v21  ;;  %v818_v17 = vpop.xlane.xlu1 %817  ;;  %1174 = vrot.lane.b32.xlu0 %v859_v0, %s1458_s22 }
 0x1da   :  { %v863_v43 = vadd.f32 %v847_v61, %v818_v17  ;;  %v2488_v17 = vld [vmem:[%s2695_s2 + $0x40] sm:$0xff] }
 0x1db   :  { %1140 = vst.msk [vmem:[%s2698_s5 + $0x40] sm:$0xff] %vm1131_vm1, %v2405_v59 }
 0x1dc   :  { %v720_v58 = vpop.xlane.xlu0 %719 }
 0x1dd   :  { %v2416_v1 = vadd.f32 %v2239_v33, %v720_v58  ;;  %v824_v20 = vpop.xlane.xlu1 %823  ;;  %1178 = vrot.lane.b32.xlu0 %v861_v12, %s1458_s22  ;;  %v846_v12 = vmul.f32 %v2488_v17, %v2356_v34 }
 0x1de   :  { %v865_v4 = vadd.f32 %v849_v41, %v824_v20 }
 0x1df   :  { %1142 = vst.msk [vmem:[%s2698_s5 + $0x50] sm:$0xff] %vm1131_vm1, %v2416_v1 }
 0x1e0   :  { %v726_v32 = vpop.xlane.xlu0 %725 }
 0x1e1   :  { %v2427_v38 = vadd.f32 %v2239_v33, %v726_v32  ;;  %v830_v25 = vpop.xlane.xlu1 %829  ;;  %1182 = vrot.lane.b32.xlu0 %v863_v43, %s1458_s22  ;;  %v2498_v43 = vld [vmem:[%s2695_s2 + $0x50] sm:$0xff]  ;;  %v2503_v32 = vstv %s1366_s0 }
 0x1e2   :  { %v867_v18 = vadd.f32 %v851_v56, %v830_v25  ;;  %v848_v41 = vmul.f32 %v2498_v43, %v2356_v34  ;;  %v850_v56 = vmul.f32 %v2235_v57, %v2356_v34 }
 0x1e3   :  { %1144 = vst.msk [vmem:[%s2698_s5 + $0x60] sm:$0xff] %vm1131_vm1, %v2427_v38 }
 0x1e4   :  { %v732_v8 = vpop.xlane.xlu0 %731 }
 0x1e5   :  { %v2440_v13 = vadd.f32 %v2239_v33, %v732_v8  ;;  %v836_v29 = vpop.xlane.xlu1 %835  ;;  %1186 = vrot.lane.b32.xlu0 %v865_v4, %s1458_s22  ;;  %v2458_v33 = vld [vmem:[%s2695_s2 + $0x10] sm:$0xff]  ;;  %v871_v8 = vmul.f32 %v2503_v32, %v2258_v28  ;;  %s1369_s2 = sld [smem:[#allocation2 + $0x5]] }
 0x1e6   :  { %v2445_v14 = vadd.f32 %v853_v44, %v836_v29  ;;  %v840_v45 = vmul.f32 %v2458_v33, %v2356_v34  ;;  %v2512_v29 = vstv %s1367_s12 }
 0x1e7   :  { %1146 = vst.msk [vmem:[%s2698_s5 + $0x70] sm:$0xff] %vm1131_vm1, %v2440_v13 }
 0x1e8   :  { %v791_v30 = vpop.xlane.xlu0 %790 }
 0x1e9   :  { %v854_v51 = vadd.f32 %v838_v52, %v791_v30  ;;  %v2452_v46 = vpop.permute.xlu1 %955  ;;  %1190 = vrot.lane.b32.xlu0 %v867_v18, %s1458_s22 }
 0x1eb   :  { %1164 = vrot.lane.b32.xlu1 %v854_v51, %s1458_s22  ;;  %v852_v51 = vmul.f32 %v2253_v50, %v2356_v34 }
 0x1ec   :  { %v797_v9 = vpop.xlane.xlu0 %796 }
 0x1ed   :  { %v856_v22 = vadd.f32 %v840_v45, %v797_v9  ;;  %v2463_v16 = vpop.permute.xlu1 %957  ;;  %v888_v45 = vadd.f32 %v2512_v29, %v871_v8 }
 0x1ef   :  { %1168 = vrot.lane.b32.xlu1 %v856_v22, %s1458_s22  ;;  %v904_v28 = vsub.f32 %v2170_v53, %v888_v45  ;;  %v874_v53 = vmul.f32 %v2503_v32, %v2283_v35  ;;  %v876_v45 = vmul.f32 %v2503_v32, %v2294_v23 }
 0x1f0   :  { %v803_v5 = vpop.xlane.xlu0 %802 }
 0x1f1   :  { %v858_v60 = vadd.f32 %v842_v48, %v803_v5  ;;  %v2473_v39 = vpop.permute.xlu1 %961  ;;  %v891_v35 = vadd.f32 %v2512_v29, %v874_v53 }
 0x1f3   :  { %1172 = vrot.lane.b32.xlu1 %v858_v60, %s1458_s22 }
 0x1f4   :  { %v809_v0 = vpop.xlane.xlu0 %808 }
 0x1f5   :  { %v860_v55 = vadd.f32 %v844_v27, %v809_v0  ;;  %v2483_v21 = vpop.permute.xlu1 %965  ;;  %v2524_v27 = vstv %s1369_s2 }
 0x1f7   :  { %1176 = vrot.lane.b32.xlu1 %v860_v55, %s1458_s22 }
 0x1f8   :  { %v815_v61 = vpop.xlane.xlu0 %814 }
 0x1f9   :  { %v862_v58 = vadd.f32 %v846_v12, %v815_v61  ;;  %v2493_v20 = vpop.permute.xlu1 %969 }
 0x1fb   :  { %1180 = vrot.lane.b32.xlu1 %v862_v58, %s1458_s22 }
 0x1fc   :  { %v821_v25 = vpop.xlane.xlu0 %820 }
 0x1fd   :  { %v864_v44 = vadd.f32 %v848_v41, %v821_v25  ;;  %v2505_v4 = vpop.permute.xlu1 %973  ;;  %v872_v25 = vmul.f32 %v2503_v32, %v2359_v19 }
 0x1ff   :  { %1184 = vrot.lane.b32.xlu1 %v864_v44, %s1458_s22  ;;  %v889_v8 = vadd.f32 %v2512_v29, %v872_v25  ;;  %v879_v25 = vmul.f32 %v2503_v32, %v2405_v59  ;;  %v882_v59 = vmul.f32 %v2503_v32, %v2327_v62 }
 0x200   :  { %v827_v52 = vpop.xlane.xlu0 %826 }
 0x201   :  { %v866_v18 = vadd.f32 %v850_v56, %v827_v52  ;;  %v2514_v30 = vpop.permute.xlu1 %977  ;;  %v873_v56 = vmul.f32 %v2503_v32, %v2372_v63  ;;  %v905_v19 = vsub.f32 %v2278_v7, %v889_v8  ;;  %v878_v63 = vmul.f32 %v2503_v32, %v2305_v24 }
 0x202   :  { %v907_v7 = vsub.f32 %v2183_v6, %v891_v35  ;;  %v880_v24 = vmul.f32 %v2503_v32, %v2316_v31 }
 0x203   :  { %1188 = vrot.lane.b32.xlu1 %v866_v18, %s1458_s22  ;;  %v875_v18 = vmul.f32 %v2503_v32, %v2383_v47 }
 0x204   :  { %v833_v9 = vpop.xlane.xlu0 %832 }
 0x205   :  { %v868_v22 = vadd.f32 %v852_v51, %v833_v9  ;;  %v2520_v48 = vpop.permute.xlu1 %981  ;;  %v890_v9 = vadd.f32 %v2512_v29, %v873_v56 }
 0x207   :  { %1192 = vrot.lane.b32.xlu1 %v868_v22, %s1458_s22  ;;  %v1002_v22 = vsub.f32 %v905_v19, %v2452_v46  ;;  %v906_v23 = vsub.f32 %v2458_v33, %v890_v9  ;;  %v897_v9 = vadd.f32 %v2512_v29, %v880_v24 }
 0x208   :  { %v954_v5 = vpop.permute.xlu0 %953 }
 0x209   :  { %v1001_v60 = vsub.f32 %v904_v28, %v954_v5  ;;  %v1068_v34 = vpop.permute.xlu1 %1067  ;;  %v892_v28 = vadd.f32 %v2512_v29, %v875_v18 }
 0x20b   :  { %v1018_v0 = vmul.f32 %v2524_v27, %v1001_v60  ;;  %v877_v60 = vmul.f32 %v2503_v32, %v2394_v40  ;;  %v908_v53 = vsub.f32 %v2468_v15, %v892_v28  ;;  %v895_v40 = vadd.f32 %v2512_v29, %v878_v63 }
 0x20c   :  { %v960_v55 = vpop.permute.xlu0 %959  ;;  %v896_v15 = vadd.f32 %v2512_v29, %v879_v25 }
 0x20d   :  { %v1115_v12 = vsub.f32 %v1018_v0, %v1068_v34  ;;  %v1072_v52 = vpop.permute.xlu1 %1071  ;;  %v893_v0 = vadd.f32 %v2512_v29, %v876_v45  ;;  %v1003_v34 = vsub.f32 %v906_v23, %v2463_v16  ;;  %v1004_v46 = vsub.f32 %v907_v7, %v960_v55 }
 0x20e   :  { %v894_v6 = vadd.f32 %v2512_v29, %v877_v60  ;;  %v1005_v16 = vsub.f32 %v908_v53, %v2473_v39  ;;  %v911_v19 = vsub.f32 %v2205_v42, %v895_v40  ;;  %v881_v39 = vmul.f32 %v2503_v32, %v2416_v1 }
 0x20f   :  { %1230 = vperm.xlu0 %1397, %v1115_v12   ;;  %v1019_v12 = vmul.f32 %v2524_v27, %v1002_v22  ;;  %v909_v56 = vsub.f32 %v2194_v54, %v893_v0  ;;  %v1020_v18 = vmul.f32 %v2524_v27, %v1003_v34  ;;  %v1021_v31 = vmul.f32 %v2524_v27, %v1004_v46 }
 0x210   :  { %v964_v61 = vpop.permute.xlu0 %963  ;;  %v910_v35 = vsub.f32 %v2478_v26, %v894_v6  ;;  %v1022_v63 = vmul.f32 %v2524_v27, %v1005_v16  ;;  %v884_v42 = vmul.f32 %v2503_v32, %v2338_v3  ;;  %v883_v23 = vmul.f32 %v2503_v32, %v2427_v38 }
 0x211   :  { %v1076_v5 = vpop.permute.xlu1 %1075  ;;  %v1006_v45 = vsub.f32 %v909_v56, %v964_v61  ;;  %v1117_v22 = vsub.f32 %v1020_v18, %v1072_v52  ;;  %v912_v1 = vsub.f32 %v2488_v17, %v896_v15  ;;  %v899_v52 = vadd.f32 %v2512_v29, %v882_v59 }
 0x212   :  { %v1007_v28 = vsub.f32 %v910_v35, %v2483_v21  ;;  %v898_v0 = vadd.f32 %v2512_v29, %v881_v39  ;;  %v1119_v21 = vsub.f32 %v1022_v63, %v1076_v5  ;;  %v886_v17 = vmul.f32 %v2503_v32, %v2349_v10 }
 0x213   :  { %v1023_v62 = vmul.f32 %v2524_v27, %v1006_v45  ;;  %v1009_v46 = vsub.f32 %v912_v1, %v2493_v20  ;;  %v900_v24 = vadd.f32 %v2512_v29, %v883_v23  ;;  %v915_v5 = vsub.f32 %v2227_v2, %v899_v52 }
 0x214   :  { %v968_v58 = vpop.permute.xlu0 %967  ;;  %v885_v20 = vmul.f32 %v2503_v32, %v2440_v13  ;;  %v914_v53 = vsub.f32 %v2498_v43, %v898_v0 }
 0x215   :  { %v1080_v55 = vpop.permute.xlu1 %1079  ;;  %v1008_v60 = vsub.f32 %v911_v19, %v968_v58  ;;  %v913_v58 = vsub.f32 %v2216_v37, %v897_v9  ;;  %v901_v37 = vadd.f32 %v2512_v29, %v884_v42 }
 0x216   :  { %v1011_v56 = vsub.f32 %v914_v53, %v2505_v4  ;;  %v902_v43 = vadd.f32 %v2512_v29, %v885_v20 }
 0x217   :  { %v1025_v38 = vmul.f32 %v2524_v27, %v1008_v60  ;;  %v917_v16 = vsub.f32 %v2245_v11, %v901_v37 }
 0x218   :  { %v2527_v41 = vpop.permute.xlu0 %971  ;;  %v1028_v4 = vmul.f32 %v2524_v27, %v1011_v56  ;;  %v918_v11 = vsub.f32 %v2253_v50, %v902_v43 }
 0x219   :  { %v1084_v26 = vpop.permute.xlu1 %1083  ;;  %v1010_v3 = vsub.f32 %v913_v58, %v2527_v41  ;;  %v208_v58 = vrot.slane %v1931_v36, 4 }
 0x21b   :  { %v1027_v2 = vmul.f32 %v2524_v27, %v1010_v3 }
 0x21c   :  { %v2531_v44 = vpop.permute.xlu0 %975 }
 0x21d   :  { %v1088_v6 = vpop.permute.xlu1 %1087  ;;  %v1012_v10 = vsub.f32 %v915_v5, %v2531_v44 }
 0x21e   :  { %v1125_v15 = vsub.f32 %v1028_v4, %v1088_v6 }
 0x220   :  { %v2540_v51 = vpop.permute.xlu0 %979 }
 0x221   :  { %v1014_v44 = vsub.f32 %v917_v16, %v2540_v51 }
 0x223   :  { %v1031_v51 = vmul.f32 %v2524_v27, %v1014_v44 }
 0x224   :  { %v2551_v47 = vpop.permute.xlu0 %983 }
 0x228   :  { %v1070_v33 = vpop.permute.xlu0 %1069 }
 0x229   :  { %v1116_v8 = vsub.f32 %v1019_v12, %v1070_v33  ;;  %v1024_v12 = vmul.f32 %v2524_v27, %v1007_v28  ;;  %v1026_v33 = vmul.f32 %v2524_v27, %v1009_v46  ;;  %v209_v46 = vadd.f32 %v208_v58, %v1931_v36 }
 0x22b   :  { %1235 = vperm.xlu1 %1398, %v1116_v8   ;;  %v1121_v41 = vsub.f32 %v1024_v12, %v1080_v55  ;;  %v916_v8 = vsub.f32 %v2235_v57, %v900_v24  ;;  %v1123_v32 = vsub.f32 %v1026_v33, %v1084_v26  ;;  %v903_v55 = vadd.f32 %v2512_v29, %v886_v17  ;;  %v1092_v57 = vpop.permute.xlu1 %1091 }
 0x22c   :  { %v1074_v54 = vpop.permute.xlu0 %1073  ;;  %v210_v3 = vrot.slane %v209_v46, 2 }
 0x22d   :  { %v1118_v61 = vsub.f32 %v1021_v31, %v1074_v54  ;;  %v1013_v45 = vsub.f32 %v916_v8, %v2514_v30  ;;  %v1029_v31 = vmul.f32 %v2524_v27, %v1012_v10  ;;  %v919_v19 = vsub.f32 %v2269_v49, %v903_v55 }
 0x22e   :  { %v1015_v30 = vsub.f32 %v918_v11, %v2520_v48 }
 0x22f   :  { %1245 = vperm.xlu0 %1397, %v1118_v61   ;;  %1240 = vperm.xlu1 %1398, %v1117_v22   ;;  %v1030_v29 = vmul.f32 %v2524_v27, %v1013_v45  ;;  %v1016_v54 = vsub.f32 %v919_v19, %v2551_v47  ;;  %v1096_v61 = vpop.permute.xlu1 %1095 }
 0x230   :  { %v1078_v7 = vpop.permute.xlu0 %1077  ;;  %v1032_v50 = vmul.f32 %v2524_v27, %v1015_v30 }
 0x231   :  { %v1120_v34 = vsub.f32 %v1023_v62, %v1078_v7  ;;  %v1127_v35 = vsub.f32 %v1030_v29, %v1092_v57  ;;  %v1033_v49 = vmul.f32 %v2524_v27, %v1016_v54 }
 0x232   :  { %v1129_v28 = vsub.f32 %v1032_v50, %v1096_v61 }
 0x233   :  { %1255 = vperm.xlu0 %1397, %v1120_v34   ;;  %1250 = vperm.xlu1 %1398, %v1119_v21  }
 0x234   :  { %v1082_v25 = vpop.permute.xlu0 %1081 }
 0x235   :  { %v1122_v40 = vsub.f32 %v1025_v38, %v1082_v25  ;;  %v211_v38 = vadd.f32 %v210_v3, %v209_v46 }
 0x237   :  { %1265 = vperm.xlu0 %1397, %v1122_v40   ;;  %1260 = vperm.xlu1 %1398, %v1121_v41   ;;  %v212_v17 = vrot.slane %v211_v38, 1 }
 0x238   :  { %v1086_v13 = vpop.permute.xlu0 %1085 }
 0x239   :  { %v1124_v18 = vsub.f32 %v1027_v2, %v1086_v13  ;;  %v213_v24 = vadd.f32 %v212_v17, %v211_v38 }
 0x23b   :  { %1275 = vperm.xlu0 %1397, %v1124_v18   ;;  %1270 = vperm.xlu1 %1398, %v1123_v32  }
 0x23c   :  { %v1090_v59 = vpop.permute.xlu0 %1089 }
 0x23d   :  { %v1126_v9 = vsub.f32 %v1029_v31, %v1090_v59 }
 0x23f   :  { %1285 = vperm.xlu0 %1397, %v1126_v9   ;;  %1280 = vperm.xlu1 %1398, %v1125_v15  }
 0x240   :  { %v1094_v39 = vpop.permute.xlu0 %1093 }
 0x241   :  { %v1128_v22 = vsub.f32 %v1031_v51, %v1094_v39 }
 0x243   :  { %1295 = vperm.xlu0 %1397, %v1128_v22   ;;  %1290 = vperm.xlu1 %1398, %v1127_v35  }
 0x244   :  { %v1098_v63 = vpop.permute.xlu0 %1097 }
 0x245   :  { %v1130_v60 = vsub.f32 %v1033_v49, %v1098_v63 }
 0x247   :  { %1305 = vperm.xlu0 %1397, %v1130_v60   ;;  %1300 = vperm.xlu1 %1398, %v1129_v28  }
 0x248   :  { %v1167_v48 = vpop.permute.xlu0 %1166 }
 0x249   :  { %1213 = vst.msk [vmem:[%s2699_s6 + $0x8] sm:$0xff] %vm1131_vm1, %v1167_v48 }
 0x24b   :  { %1194 = vrot.lane.b32.xlu1 %v2445_v14, %s1458_s22 }
 0x24c   :  { %v1171_v47 = vpop.permute.xlu0 %1170 }
 0x24d   :  { %1215 = vst.msk [vmem:[%s2699_s6 + $0x18] sm:$0xff] %vm1131_vm1, %v1171_v47 }
 0x250   :  { %v1175_v27 = vpop.permute.xlu0 %1174 }
 0x251   :  { %1217 = vst.msk [vmem:[%s2699_s6 + $0x28] sm:$0xff] %vm1131_vm1, %v1175_v27 }
 0x254   :  { %v1179_v62 = vpop.permute.xlu0 %1178 }
 0x255   :  { %1219 = vst.msk [vmem:[%s2699_s6 + $0x38] sm:$0xff] %vm1131_vm1, %v1179_v62 }
 0x258   :  { %v1183_v42 = vpop.permute.xlu0 %1182 }
 0x259   :  { %1221 = vst.msk [vmem:[%s2699_s6 + $0x48] sm:$0xff] %vm1131_vm1, %v1183_v42 }
 0x25c   :  { %v1187_v14 = vpop.permute.xlu0 %1186 }
 0x25d   :  { %1223 = vst.msk [vmem:[%s2699_s6 + $0x58] sm:$0xff] %vm1131_vm1, %v1187_v14  ;;  %v1165_v23 = vpop.permute.xlu1 %1164 }
 0x25e   :  { %1212 = vst.msk [vmem:[%s2699_s6] sm:$0xff] %vm1131_vm1, %v1165_v23 }
 0x260   :  { %v1191_v1 = vpop.permute.xlu0 %1190 }
 0x261   :  { %1225 = vst.msk [vmem:[%s2699_s6 + $0x68] sm:$0xff] %vm1131_vm1, %v1191_v1  ;;  %v1169_v26 = vpop.permute.xlu1 %1168 }
 0x262   :  { %1214 = vst.msk [vmem:[%s2699_s6 + $0x10] sm:$0xff] %vm1131_vm1, %v1169_v26 }
 0x265   :  { %v1173_v52 = vpop.permute.xlu1 %1172 }
 0x266   :  { %1216 = vst.msk [vmem:[%s2699_s6 + $0x20] sm:$0xff] %vm1131_vm1, %v1173_v52 }
 0x269   :  { %v1177_v7 = vpop.permute.xlu1 %1176 }
 0x26a   :  { %1218 = vst.msk [vmem:[%s2699_s6 + $0x30] sm:$0xff] %vm1131_vm1, %v1177_v7 }
 0x26d   :  { %v1181_v0 = vpop.permute.xlu1 %1180 }
 0x26e   :  { %1220 = vst.msk [vmem:[%s2699_s6 + $0x40] sm:$0xff] %vm1131_vm1, %v1181_v0 }
 0x271   :  { %v1185_v21 = vpop.permute.xlu1 %1184 }
 0x272   :  { %1222 = vst.msk [vmem:[%s2699_s6 + $0x50] sm:$0xff] %vm1131_vm1, %v1185_v21 }
 0x275   :  { %v1189_v34 = vpop.permute.xlu1 %1188 }
 0x276   :  { %1224 = vst.msk [vmem:[%s2699_s6 + $0x60] sm:$0xff] %vm1131_vm1, %v1189_v34 }
 0x279   :  { %v1193_v12 = vpop.permute.xlu1 %1192 }
 0x27a   :  { %1226 = vst.msk [vmem:[%s2699_s6 + $0x70] sm:$0xff] %vm1131_vm1, %v1193_v12 }
 0x28a   :  { %v1231_v5 = vpop.permute.xlu0 %1230 }
 0x28b   :  { %v1308_v37 = vadd.f32 %v1231_v5, %v213_v24 }
 0x28d   :  { %1324 = vst [vmem:[#allocation5] sm:$0xff] %v1308_v37 }
 0x2a6   :  { %v1236_v25 = vpop.permute.xlu1 %1235 }
 0x2a7   :  { %v1309_v20 = vadd.f32 %v1236_v25, %v213_v24 }
 0x2a9   :  { %1325 = vst [vmem:[#allocation5 + $0x8] sm:$0xff] %v1309_v20 }
 0x2aa   :  { %v1246_v53 = vpop.permute.xlu0 %1245  ;;  %v1241_v41 = vpop.permute.xlu1 %1240 }
 0x2ab   :  { %v1311_v40 = vadd.f32 %v1246_v53, %v213_v24  ;;  %v1310_v36 = vadd.f32 %v1241_v41, %v213_v24 }
 0x2ad   :  { %1327 = vst [vmem:[#allocation5 + $0x18] sm:$0xff] %v1311_v40  ;;  %1326 = vst [vmem:[#allocation5 + $0x10] sm:$0xff] %v1310_v36 }
 0x2ae   :  { %v1256_v33 = vpop.permute.xlu0 %1255  ;;  %v1251_v6 = vpop.permute.xlu1 %1250 }
 0x2af   :  { %v1313_v56 = vadd.f32 %v1256_v33, %v213_v24  ;;  %v1312_v10 = vadd.f32 %v1251_v6, %v213_v24 }
 0x2b1   :  { %1329 = vst [vmem:[#allocation5 + $0x28] sm:$0xff] %v1313_v56  ;;  %1328 = vst [vmem:[#allocation5 + $0x20] sm:$0xff] %v1312_v10 }
 0x2b2   :  { %v1266_v2 = vpop.permute.xlu0 %1265  ;;  %v1261_v8 = vpop.permute.xlu1 %1260 }
 0x2b3   :  { %v1315_v16 = vadd.f32 %v1266_v2, %v213_v24  ;;  %v1314_v13 = vadd.f32 %v1261_v8, %v213_v24 }
 0x2b5   :  { %1331 = vst [vmem:[#allocation5 + $0x38] sm:$0xff] %v1315_v16  ;;  %1330 = vst [vmem:[#allocation5 + $0x30] sm:$0xff] %v1314_v13 }
 0x2b6   :  { %v1276_v43 = vpop.permute.xlu0 %1275  ;;  %v1271_v32 = vpop.permute.xlu1 %1270 }
 0x2b7   :  { %v1317_v55 = vadd.f32 %v1276_v43, %v213_v24  ;;  %v1316_v18 = vadd.f32 %v1271_v32, %v213_v24 }
 0x2b9   :  { %1333 = vst [vmem:[#allocation5 + $0x48] sm:$0xff] %v1317_v55  ;;  %1332 = vst [vmem:[#allocation5 + $0x40] sm:$0xff] %v1316_v18 }
 0x2ba   :  { %v1286_v45 = vpop.permute.xlu0 %1285  ;;  %v1281_v4 = vpop.permute.xlu1 %1280 }
 0x2bb   :  { %v1319_v44 = vadd.f32 %v1286_v45, %v213_v24  ;;  %v1318_v31 = vadd.f32 %v1281_v4, %v213_v24 }
 0x2bd   :  { %1335 = vst [vmem:[#allocation5 + $0x58] sm:$0xff] %v1319_v44  ;;  %1334 = vst [vmem:[#allocation5 + $0x50] sm:$0xff] %v1318_v31 }
 0x2be   :  { %v1296_v57 = vpop.permute.xlu0 %1295  ;;  %v1291_v59 = vpop.permute.xlu1 %1290 }
 0x2bf   :  { %v1321_v11 = vadd.f32 %v1296_v57, %v213_v24  ;;  %v1320_v15 = vadd.f32 %v1291_v59, %v213_v24 }
 0x2c1   :  { %1337 = vst [vmem:[#allocation5 + $0x68] sm:$0xff] %v1321_v11  ;;  %1336 = vst [vmem:[#allocation5 + $0x60] sm:$0xff] %v1320_v15 }
 0x2c2   :  { %v1306_v19 = vpop.permute.xlu0 %1305  ;;  %v1301_v9 = vpop.permute.xlu1 %1300 }
 0x2c3   :  { %v1323_v29 = vadd.f32 %v1306_v19, %v213_v24  ;;  %v1322_v30 = vadd.f32 %v1301_v9, %v213_v24 }
 0x2c5   :  { %1339 = vst [vmem:[#allocation5 + $0x78] sm:$0xff] %v1323_v29  ;;  %1338 = vst [vmem:[#allocation5 + $0x70] sm:$0xff] %v1322_v30 }
 0x2c6   :  { %v1195_v54 = vpop.permute.xlu1 %1194 }
 0x2c7   :  { %1438 = shalt.err (!%p1435_p9)
}
 0x2c8   :  { %s1460_s18 = smov 128   ;;  %s1461_s19 = smov 8   ;;  %1227 = vst.msk [vmem:[%s2699_s6 + $0x78] sm:$0xff] %vm1131_vm1, %v1195_v54 }
 0x2c9   :  { %1355 = dma.vmem_to_hbm [thread:$0]  %s1350_s16, 2048, %s2700_s7, [#allocation3], %s1460_s18, %s1460_s18, %s1461_s19  }
 0x2ca   :  { %1449 = dma.done.wait [#allocation3], 2048  }
 0x2cb   :  { %1450 = vsyncadd [#allocation3], 4294965248 }
 0x2cc   :  { %1363 = vsyncpa [#allocation3], 1 }
 0x2cd   :  { %1364 = vsyncpa [#allocation4], 1 }

</bundles_post_ra>
